<compile_context>
chip_gen: v7x
topology: tpu7x:2x2x1
jax: 0.10.0
libtpu: 0.0.40
codegen_flags: <defaults>
</compile_context>

<pallas_src>
import jax
import jax.numpy as jnp
import numpy as np
from jax.experimental import pallas as pl
from jax.experimental.pallas import tpu as pltpu

BN_EPS = 1e-5
_M_TARGET = 256            # target rows of the per-phase (M, 64) f32 accumulator


# ----------------------------------------------------------------------------
# Fused kernel: conv1 (7 row-tap matmuls, band-tiled) + folded BN + ReLU +
# maxpool 3x3 / stride 2 / pad 1.   One grid step == one image.
# ----------------------------------------------------------------------------
def _make_stem_kernel(oh, pow_, owo, poh, RB, nb, cout, ktap):
    M = RB * pow_            # conv output pixels per band and column phase
    ZH = 2 * poh             # conv rows the height pool reads (oh or oh + 1)

    def kernel(ee_ref, eo_ref, oe_ref, oo_ref, w_ref, bias_ref, o_ref, zw_ref):
        bias = bias_ref[...]                                   # (1, cout) f32

        # bottom zero row of the pool padding (only exists when oh is odd)
        if ZH > oh:
            zw_ref[oh:ZH] = jnp.zeros((ZH - oh, pow_, cout), jnp.float32)

        if owo < pow_:       # odd-column phase was padded to pow_ columns
            keep = jax.lax.broadcasted_iota(jnp.int32, (RB, pow_, cout), 1) < owo
        else:
            keep = None

        def band(b, carry):
            # clamp so the last band recomputes a few rows instead of
            # reading/writing out of range when oh % RB != 0
            r0 = jnp.minimum(b * RB, oh - RB)
            acc_e = jnp.zeros((M, cout), jnp.float32)
            acc_o = jnp.zeros((M, cout), jnp.float32)
            for kh in range(7):
                if kh % 2 == 0:
                    rr = r0 + (kh // 2)
                    te = ee_ref[0, pl.ds(rr, RB)]              # (RB, pow_, 21)
                    to = eo_ref[0, pl.ds(rr, RB)]
                else:
                    rr = r0 + ((kh - 1) // 2)
                    te = oe_ref[0, pl.ds(rr, RB)]
                    to = oo_ref[0, pl.ds(rr, RB)]
                wk = w_ref[kh]                                 # (21, cout) bf16
                acc_e = acc_e + jnp.dot(te.reshape(M, ktap), wk,
                                        preferred_element_type=jnp.float32)
                acc_o = acc_o + jnp.dot(to.reshape(M, ktap), wk,
                                        preferred_element_type=jnp.float32)

            # folded-BN bias + ReLU
            ye = jnp.maximum(acc_e + bias, 0.0).reshape(RB, pow_, cout)
            yo = jnp.maximum(acc_o + bias, 0.0).reshape(RB, pow_, cout)
            if keep is not None:
                yo = jnp.where(keep, yo, 0.0)                  # drop padded col

            # width pool: zw[:, q] = max(ye[:, q], yo[:, q], yo[:, q-1])
            t = jnp.maximum(ye, yo)
            prev = jnp.concatenate(
                [jnp.zeros((RB, 1, cout), jnp.float32), yo[:, :pow_ - 1]], axis=1)
            zw_ref[pl.ds(r0, RB)] = jnp.maximum(t, prev)
            return carry

        jax.lax.fori_loop(0, nb, band, 0)

        # height pool: out[p] = max(zw[2p-1], zw[2p], zw[2p+1]), zw[-1] = 0
        zw = zw_ref[...].reshape(poh, 2, pow_, cout)
        ev = zw[:, 0]                    # conv rows 2p
        od = zw[:, 1]                    # conv rows 2p+1
        c = jnp.maximum(ev, od)
        o_ref[0, 0:1] = c[0:1].astype(o_ref.dtype)
        if poh > 1:
            o_ref[0, 1:poh] = jnp.maximum(c[1:], od[:poh - 1]).astype(o_ref.dtype)

    return kernel


def _stem_pallas(ee, eo, oe, oo, w_k, bias, *, oh, poh, pow_, owo, RB, nb):
    n = ee.shape[0]
    cout = w_k.shape[-1]
    ktap = w_k.shape[1]
    kernel = _make_stem_kernel(oh, pow_, owo, poh, RB, nb, cout, ktap)

    def img_block(arr):
        return pl.BlockSpec((1,) + arr.shape[1:], lambda i: (i, 0, 0, 0))

    return pl.pallas_call(
        kernel,
        out_shape=jax.ShapeDtypeStruct((n, poh, pow_, cout), jnp.float32),
        grid_spec=pltpu.PrefetchScalarGridSpec(
            num_scalar_prefetch=0,
            grid=(n,),
            in_specs=[
                img_block(ee), img_block(eo), img_block(oe), img_block(oo),
                pl.BlockSpec(w_k.shape, lambda i: (0, 0, 0)),
                pl.BlockSpec(bias.shape, lambda i: (0, 0)),
            ],
            out_specs=pl.BlockSpec((1, poh, pow_, cout), lambda i: (i, 0, 0, 0)),
            scratch_shapes=[pltpu.VMEM((2 * poh, pow_, cout), jnp.float32)],
        ),
        compiler_params=pltpu.CompilerParams(
            dimension_semantics=("parallel",),
            vmem_limit_bytes=32 * 1024 * 1024,
        ),
    )(ee, eo, oe, oo, w_k, bias)


# ----------------------------------------------------------------------------
# Wrapper = visible_module.forward (NCHW in / NCHW out)
# ----------------------------------------------------------------------------
def visible_module_forward(x_nchw, w_oihw, gamma, beta, run_mean, run_var):
    n, cin, h, w = x_nchw.shape
    cout = w_oihw.shape[0]
    assert (cin, w_oihw.shape[2], w_oihw.shape[3]) == (3, 7, 7)

    oh = (h + 6 - 7) // 2 + 1              # conv output rows
    ow = (w + 6 - 7) // 2 + 1              # conv output cols
    poh = (oh - 1) // 2 + 1                # pooled rows
    pow_ = (ow - 1) // 2 + 1               # pooled cols == # even conv cols
    owo = ow // 2                          # # odd conv cols (pow_ or pow_-1)

    # pad + layout glue (cheap width-tap rearrangement of the 3-channel input)
    extra_w = max(0, (4 * pow_ + 5) - (w + 6))   # so odd-phase taps reach pow_ cols
    x = jnp.transpose(x_nchw, (0, 2, 3, 1))                      # NHWC
    xp = jnp.pad(x, ((0, 0), (3, 3), (3, 3 + extra_w), (0, 0)))
    xpe = xp[:, 0::2][:, :oh + 3]          # even padded rows
    xpo = xp[:, 1::2][:, :oh + 2]          # odd padded rows

    def width_taps(rows, col0):
        # taps[..., kw*3 + c] = rows[..., col0 + 4*q + kw, c],  q = 0..pow_-1
        taps = [rows[:, :, col0 + kw: col0 + kw + 4 * (pow_ - 1) + 1: 4, :]
                for kw in range(7)]
        t = jnp.stack(taps, axis=3)                              # (n, R, pow_, 7, 3)
        return t.reshape(t.shape[0], t.shape[1], pow_, 7 * cin).astype(jnp.bfloat16)

    ee = width_taps(xpe, 0)     # even rows, even conv cols
    eo = width_taps(xpe, 2)     # even rows, odd  conv cols (padded to pow_)
    oe = width_taps(xpo, 0)     # odd  rows, even conv cols
    oo = width_taps(xpo, 2)     # odd  rows, odd  conv cols (padded to pow_)

    # fold BN (running stats) into the weights + bias (f32, then bf16 weights)
    inv_std = 1.0 / jnp.sqrt(run_var.astype(jnp.float32) + BN_EPS)
    scale = gamma.astype(jnp.float32) * inv_std
    bias = (beta.astype(jnp.float32)
            - run_mean.astype(jnp.float32) * scale).reshape(1, cout)
    w_k = jnp.transpose(w_oihw.astype(jnp.float32), (2, 3, 1, 0)).reshape(7, 7 * cin, cout)
    w_k = (w_k * scale.reshape(1, 1, cout)).astype(jnp.bfloat16)

    # band size: keep the per-phase (RB*pow_, 64) f32 accumulator vreg-sized
    RB = max(1, min(oh, _M_TARGET // max(pow_, 1)))
    nb = -(-oh // RB)

    out = _stem_pallas(ee, eo, oe, oo, w_k, bias,
                       oh=oh, poh=poh, pow_=pow_, owo=owo, RB=RB, nb=nb)
    return jnp.transpose(out, (0, 3, 1, 2))                     # back to NCHW


# ----------------------------------------------------------------------------
# Pure-JAX reference (correctness check only)
# ----------------------------------------------------------------------------
def reference_forward(x_nchw, w_oihw, gamma, beta, run_mean, run_var):
    y = jax.lax.conv_general_dilated(
        x_nchw, w_oihw, window_strides=(2, 2), padding=((3, 3), (3, 3)),
        dimension_numbers=("NCHW", "OIHW", "NCHW"))
    inv_std = 1.0 / jnp.sqrt(run_var + BN_EPS)
    scale = gamma * inv_std
    bias = beta - run_mean * scale
    y = y * scale[None, :, None, None] + bias[None, :, None, None]
    y = jnp.maximum(y, 0.0)
    yp = jnp.pad(y, ((0, 0), (0, 0), (1, 1), (1, 1)), constant_values=-jnp.inf)
    return jax.lax.reduce_window(yp, -jnp.inf, jax.lax.max,
                                 (1, 1, 3, 3), (1, 1, 2, 2), "VALID")


if __name__ == "__main__":
    key = jax.random.PRNGKey(0)
    k1, k2, k3, k4, k5, k6 = jax.random.split(key, 6)

    # deterministic synthetic parameters (shapes from resnet50 conv1/bn1)
    w = jax.random.normal(k1, (64, 3, 7, 7), jnp.float32) * 0.05
    gamma = jax.random.uniform(k2, (64,), jnp.float32, 0.5, 1.5)
    beta = jax.random.normal(k3, (64,), jnp.float32) * 0.1
    run_mean = jax.random.normal(k4, (64,), jnp.float32) * 0.1
    run_var = jax.random.uniform(k5, (64,), jnp.float32, 0.5, 1.5)

    # small input consistent with the module: NCHW, 3 channels
    x = jax.random.normal(k6, (2, 3, 32, 32), jnp.float32)

    out = visible_module_forward(x, w, gamma, beta, run_mean, run_var)
    out = jax.block_until_ready(out)            # (2, 64, 8, 8)

    ref = jax.block_until_ready(
        reference_forward(x, w, gamma, beta, run_mean, run_var))

    assert out.shape == ref.shape, (out.shape, ref.shape)
    # bf16 taps / scale-folded bf16 weights (f32 accumulation) -> bf16 tolerance
    np.testing.assert_allclose(np.asarray(out), np.asarray(ref),
                               rtol=3e-2, atol=3e-2)
    print("KERNEL_OK")
</pallas_src>

<mosaic_0001>
module attributes {stable_mosaic.version = 11 : i64} {
  func.func @kernel(%arg0: i32, %arg1: memref<1x19x8x21xbf16, #tpu.memory_space<vmem>>, %arg2: memref<1x19x8x21xbf16, #tpu.memory_space<vmem>>, %arg3: memref<1x18x8x21xbf16, #tpu.memory_space<vmem>>, %arg4: memref<1x18x8x21xbf16, #tpu.memory_space<vmem>>, %arg5: memref<7x21x64xbf16, #tpu.memory_space<vmem>>, %arg6: memref<1x64xf32, #tpu.memory_space<vmem>>, %arg7: memref<1x8x8x64xf32, #tpu.memory_space<vmem>>, %arg8: memref<16x8x64xf32, #tpu.memory_space<vmem>>) attributes {dimension_semantics = [#tpu.dimension_semantics<parallel>], iteration_bounds = array<i64: 2>, scalar_prefetch = 0 : i64, scratch_operands = 1 : i64, tpu.core_type = #tpu.core_type<tc>, window_params = [{transform_indices = @transform_0, window_bounds = array<i64: 1, 19, 8, 21>}, {transform_indices = @transform_1, window_bounds = array<i64: 1, 19, 8, 21>}, {transform_indices = @transform_2, window_bounds = array<i64: 1, 18, 8, 21>}, {transform_indices = @transform_3, window_bounds = array<i64: 1, 18, 8, 21>}, {pipeline_mode = #tpu.pipeline_mode<synchronous>, transform_indices = @transform_4, window_bounds = array<i64: 7, 21, 64>}, {pipeline_mode = #tpu.pipeline_mode<synchronous>, transform_indices = @transform_5, window_bounds = array<i64: 1, 64>}, {transform_indices = @transform_6, window_bounds = array<i64: 1, 8, 8, 64>}]} {
    %c0 = arith.constant 0 : index
    %c0_0 = arith.constant 0 : index
    %0 = vector.load %arg6[%c0, %c0_0] : memref<1x64xf32, #tpu.memory_space<vmem>>, vector<1x64xf32>
    %c0_i32 = arith.constant 0 : i32
    %c16_i32 = arith.constant 16 : i32
    %1 = arith.muli %c0_i32, %c16_i32 : i32
    %c0_i32_1 = arith.constant 0 : i32
    %2 = arith.minsi %1, %c0_i32_1 : i32
    %cst = arith.constant 0.000000e+00 : f32
    %3 = vector.broadcast %cst : f32 to vector<128x64xf32>
    %cst_2 = arith.constant 0.000000e+00 : f32
    %4 = vector.broadcast %cst_2 : f32 to vector<128x64xf32>
    %c0_i32_3 = arith.constant 0 : i32
    %5 = arith.addi %2, %c0_i32_3 : i32
    %c0_4 = arith.constant 0 : index
    %6 = arith.index_cast %5 : i32 to index
    %c0_5 = arith.constant 0 : index
    %c0_6 = arith.constant 0 : index
    %7 = vector.load %arg1[%c0_4, %6, %c0_5, %c0_6] : memref<1x19x8x21xbf16, #tpu.memory_space<vmem>>, vector<1x16x8x21xbf16>
    %8 = vector.shape_cast %7 : vector<1x16x8x21xbf16> to vector<16x8x21xbf16>
    %c0_7 = arith.constant 0 : index
    %9 = arith.index_cast %5 : i32 to index
    %c0_8 = arith.constant 0 : index
    %c0_9 = arith.constant 0 : index
    %10 = vector.load %arg2[%c0_7, %9, %c0_8, %c0_9] : memref<1x19x8x21xbf16, #tpu.memory_space<vmem>>, vector<1x16x8x21xbf16>
    %11 = vector.shape_cast %10 : vector<1x16x8x21xbf16> to vector<16x8x21xbf16>
    %c0_10 = arith.constant 0 : index
    %c0_11 = arith.constant 0 : index
    %c0_12 = arith.constant 0 : index
    %12 = vector.load %arg5[%c0_10, %c0_11, %c0_12] : memref<7x21x64xbf16, #tpu.memory_space<vmem>>, vector<1x21x64xbf16>
    %13 = vector.shape_cast %12 : vector<1x21x64xbf16> to vector<21x64xbf16>
    %14 = vector.shape_cast %8 : vector<16x8x21xbf16> to vector<128x21xbf16>
    %cst_13 = arith.constant dense<0.000000e+00> : vector<128x64xf32>
    %15 = tpu.matmul %14, %13, %cst_13 {dimension_numbers = #tpu.dot_dimension_numbers<[1], [0], [0], [1], [0, 0, 1, 1], [], []>} : vector<128x21xbf16>, vector<21x64xbf16>, vector<128x64xf32> -> vector<128x64xf32>
    %16 = arith.addf %3, %15 : vector<128x64xf32>
    %17 = vector.shape_cast %11 : vector<16x8x21xbf16> to vector<128x21xbf16>
    %cst_14 = arith.constant dense<0.000000e+00> : vector<128x64xf32>
    %18 = tpu.matmul %17, %13, %cst_14 {dimension_numbers = #tpu.dot_dimension_numbers<[1], [0], [0], [1], [0, 0, 1, 1], [], []>} : vector<128x21xbf16>, vector<21x64xbf16>, vector<128x64xf32> -> vector<128x64xf32>
    %19 = arith.addf %4, %18 : vector<128x64xf32>
    %c0_i32_15 = arith.constant 0 : i32
    %20 = arith.addi %2, %c0_i32_15 : i32
    %c0_16 = arith.constant 0 : index
    %21 = arith.index_cast %20 : i32 to index
    %c0_17 = arith.constant 0 : index
    %c0_18 = arith.constant 0 : index
    %22 = vector.load %arg3[%c0_16, %21, %c0_17, %c0_18] : memref<1x18x8x21xbf16, #tpu.memory_space<vmem>>, vector<1x16x8x21xbf16>
    %23 = vector.shape_cast %22 : vector<1x16x8x21xbf16> to vector<16x8x21xbf16>
    %c0_19 = arith.constant 0 : index
    %24 = arith.index_cast %20 : i32 to index
    %c0_20 = arith.constant 0 : index
    %c0_21 = arith.constant 0 : index
    %25 = vector.load %arg4[%c0_19, %24, %c0_20, %c0_21] : memref<1x18x8x21xbf16, #tpu.memory_space<vmem>>, vector<1x16x8x21xbf16>
    %26 = vector.shape_cast %25 : vector<1x16x8x21xbf16> to vector<16x8x21xbf16>
    %c1 = arith.constant 1 : index
    %c0_22 = arith.constant 0 : index
    %c0_23 = arith.constant 0 : index
    %27 = vector.load %arg5[%c1, %c0_22, %c0_23] : memref<7x21x64xbf16, #tpu.memory_space<vmem>>, vector<1x21x64xbf16>
    %28 = vector.shape_cast %27 : vector<1x21x64xbf16> to vector<21x64xbf16>
    %29 = vector.shape_cast %23 : vector<16x8x21xbf16> to vector<128x21xbf16>
    %cst_24 = arith.constant dense<0.000000e+00> : vector<128x64xf32>
    %30 = tpu.matmul %29, %28, %cst_24 {dimension_numbers = #tpu.dot_dimension_numbers<[1], [0], [0], [1], [0, 0, 1, 1], [], []>} : vector<128x21xbf16>, vector<21x64xbf16>, vector<128x64xf32> -> vector<128x64xf32>
    %31 = arith.addf %16, %30 : vector<128x64xf32>
    %32 = vector.shape_cast %26 : vector<16x8x21xbf16> to vector<128x21xbf16>
    %cst_25 = arith.constant dense<0.000000e+00> : vector<128x64xf32>
    %33 = tpu.matmul %32, %28, %cst_25 {dimension_numbers = #tpu.dot_dimension_numbers<[1], [0], [0], [1], [0, 0, 1, 1], [], []>} : vector<128x21xbf16>, vector<21x64xbf16>, vector<128x64xf32> -> vector<128x64xf32>
    %34 = arith.addf %19, %33 : vector<128x64xf32>
    %c1_i32 = arith.constant 1 : i32
    %35 = arith.addi %2, %c1_i32 : i32
    %c0_26 = arith.constant 0 : index
    %36 = arith.index_cast %35 : i32 to index
    %c0_27 = arith.constant 0 : index
    %c0_28 = arith.constant 0 : index
    %37 = vector.load %arg1[%c0_26, %36, %c0_27, %c0_28] : memref<1x19x8x21xbf16, #tpu.memory_space<vmem>>, vector<1x16x8x21xbf16>
    %38 = vector.shape_cast %37 : vector<1x16x8x21xbf16> to vector<16x8x21xbf16>
    %c0_29 = arith.constant 0 : index
    %39 = arith.index_cast %35 : i32 to index
    %c0_30 = arith.constant 0 : index
    %c0_31 = arith.constant 0 : index
    %40 = vector.load %arg2[%c0_29, %39, %c0_30, %c0_31] : memref<1x19x8x21xbf16, #tpu.memory_space<vmem>>, vector<1x16x8x21xbf16>
    %41 = vector.shape_cast %40 : vector<1x16x8x21xbf16> to vector<16x8x21xbf16>
    %c2 = arith.constant 2 : index
    %c0_32 = arith.constant 0 : index
    %c0_33 = arith.constant 0 : index
    %42 = vector.load %arg5[%c2, %c0_32, %c0_33] : memref<7x21x64xbf16, #tpu.memory_space<vmem>>, vector<1x21x64xbf16>
    %43 = vector.shape_cast %42 : vector<1x21x64xbf16> to vector<21x64xbf16>
    %44 = vector.shape_cast %38 : vector<16x8x21xbf16> to vector<128x21xbf16>
    %cst_34 = arith.constant dense<0.000000e+00> : vector<128x64xf32>
    %45 = tpu.matmul %44, %43, %cst_34 {dimension_numbers = #tpu.dot_dimension_numbers<[1], [0], [0], [1], [0, 0, 1, 1], [], []>} : vector<128x21xbf16>, vector<21x64xbf16>, vector<128x64xf32> -> vector<128x64xf32>
    %46 = arith.addf %31, %45 : vector<128x64xf32>
    %47 = vector.shape_cast %41 : vector<16x8x21xbf16> to vector<128x21xbf16>
    %cst_35 = arith.constant dense<0.000000e+00> : vector<128x64xf32>
    %48 = tpu.matmul %47, %43, %cst_35 {dimension_numbers = #tpu.dot_dimension_numbers<[1], [0], [0], [1], [0, 0, 1, 1], [], []>} : vector<128x21xbf16>, vector<21x64xbf16>, vector<128x64xf32> -> vector<128x64xf32>
    %49 = arith.addf %34, %48 : vector<128x64xf32>
    %c1_i32_36 = arith.constant 1 : i32
    %50 = arith.addi %2, %c1_i32_36 : i32
    %c0_37 = arith.constant 0 : index
    %51 = arith.index_cast %50 : i32 to index
    %c0_38 = arith.constant 0 : index
    %c0_39 = arith.constant 0 : index
    %52 = vector.load %arg3[%c0_37, %51, %c0_38, %c0_39] : memref<1x18x8x21xbf16, #tpu.memory_space<vmem>>, vector<1x16x8x21xbf16>
    %53 = vector.shape_cast %52 : vector<1x16x8x21xbf16> to vector<16x8x21xbf16>
    %c0_40 = arith.constant 0 : index
    %54 = arith.index_cast %50 : i32 to index
    %c0_41 = arith.constant 0 : index
    %c0_42 = arith.constant 0 : index
    %55 = vector.load %arg4[%c0_40, %54, %c0_41, %c0_42] : memref<1x18x8x21xbf16, #tpu.memory_space<vmem>>, vector<1x16x8x21xbf16>
    %56 = vector.shape_cast %55 : vector<1x16x8x21xbf16> to vector<16x8x21xbf16>
    %c3 = arith.constant 3 : index
    %c0_43 = arith.constant 0 : index
    %c0_44 = arith.constant 0 : index
    %57 = vector.load %arg5[%c3, %c0_43, %c0_44] : memref<7x21x64xbf16, #tpu.memory_space<vmem>>, vector<1x21x64xbf16>
    %58 = vector.shape_cast %57 : vector<1x21x64xbf16> to vector<21x64xbf16>
    %59 = vector.shape_cast %53 : vector<16x8x21xbf16> to vector<128x21xbf16>
    %cst_45 = arith.constant dense<0.000000e+00> : vector<128x64xf32>
    %60 = tpu.matmul %59, %58, %cst_45 {dimension_numbers = #tpu.dot_dimension_numbers<[1], [0], [0], [1], [0, 0, 1, 1], [], []>} : vector<128x21xbf16>, vector<21x64xbf16>, vector<128x64xf32> -> vector<128x64xf32>
    %61 = arith.addf %46, %60 : vector<128x64xf32>
    %62 = vector.shape_cast %56 : vector<16x8x21xbf16> to vector<128x21xbf16>
    %cst_46 = arith.constant dense<0.000000e+00> : vector<128x64xf32>
    %63 = tpu.matmul %62, %58, %cst_46 {dimension_numbers = #tpu.dot_dimension_numbers<[1], [0], [0], [1], [0, 0, 1, 1], [], []>} : vector<128x21xbf16>, vector<21x64xbf16>, vector<128x64xf32> -> vector<128x64xf32>
    %64 = arith.addf %49, %63 : vector<128x64xf32>
    %c2_i32 = arith.constant 2 : i32
    %65 = arith.addi %2, %c2_i32 : i32
    %c0_47 = arith.constant 0 : index
    %66 = arith.index_cast %65 : i32 to index
    %c0_48 = arith.constant 0 : index
    %c0_49 = arith.constant 0 : index
    %67 = vector.load %arg1[%c0_47, %66, %c0_48, %c0_49] : memref<1x19x8x21xbf16, #tpu.memory_space<vmem>>, vector<1x16x8x21xbf16>
    %68 = vector.shape_cast %67 : vector<1x16x8x21xbf16> to vector<16x8x21xbf16>
    %c0_50 = arith.constant 0 : index
    %69 = arith.index_cast %65 : i32 to index
    %c0_51 = arith.constant 0 : index
    %c0_52 = arith.constant 0 : index
    %70 = vector.load %arg2[%c0_50, %69, %c0_51, %c0_52] : memref<1x19x8x21xbf16, #tpu.memory_space<vmem>>, vector<1x16x8x21xbf16>
    %71 = vector.shape_cast %70 : vector<1x16x8x21xbf16> to vector<16x8x21xbf16>
    %c4 = arith.constant 4 : index
    %c0_53 = arith.constant 0 : index
    %c0_54 = arith.constant 0 : index
    %72 = vector.load %arg5[%c4, %c0_53, %c0_54] : memref<7x21x64xbf16, #tpu.memory_space<vmem>>, vector<1x21x64xbf16>
    %73 = vector.shape_cast %72 : vector<1x21x64xbf16> to vector<21x64xbf16>
    %74 = vector.shape_cast %68 : vector<16x8x21xbf16> to vector<128x21xbf16>
    %cst_55 = arith.constant dense<0.000000e+00> : vector<128x64xf32>
    %75 = tpu.matmul %74, %73, %cst_55 {dimension_numbers = #tpu.dot_dimension_numbers<[1], [0], [0], [1], [0, 0, 1, 1], [], []>} : vector<128x21xbf16>, vector<21x64xbf16>, vector<128x64xf32> -> vector<128x64xf32>
    %76 = arith.addf %61, %75 : vector<128x64xf32>
    %77 = vector.shape_cast %71 : vector<16x8x21xbf16> to vector<128x21xbf16>
    %cst_56 = arith.constant dense<0.000000e+00> : vector<128x64xf32>
    %78 = tpu.matmul %77, %73, %cst_56 {dimension_numbers = #tpu.dot_dimension_numbers<[1], [0], [0], [1], [0, 0, 1, 1], [], []>} : vector<128x21xbf16>, vector<21x64xbf16>, vector<128x64xf32> -> vector<128x64xf32>
    %79 = arith.addf %64, %78 : vector<128x64xf32>
    %c2_i32_57 = arith.constant 2 : i32
    %80 = arith.addi %2, %c2_i32_57 : i32
    %c0_58 = arith.constant 0 : index
    %81 = arith.index_cast %80 : i32 to index
    %c0_59 = arith.constant 0 : index
    %c0_60 = arith.constant 0 : index
    %82 = vector.load %arg3[%c0_58, %81, %c0_59, %c0_60] : memref<1x18x8x21xbf16, #tpu.memory_space<vmem>>, vector<1x16x8x21xbf16>
    %83 = vector.shape_cast %82 : vector<1x16x8x21xbf16> to vector<16x8x21xbf16>
    %c0_61 = arith.constant 0 : index
    %84 = arith.index_cast %80 : i32 to index
    %c0_62 = arith.constant 0 : index
    %c0_63 = arith.constant 0 : index
    %85 = vector.load %arg4[%c0_61, %84, %c0_62, %c0_63] : memref<1x18x8x21xbf16, #tpu.memory_space<vmem>>, vector<1x16x8x21xbf16>
    %86 = vector.shape_cast %85 : vector<1x16x8x21xbf16> to vector<16x8x21xbf16>
    %c5 = arith.constant 5 : index
    %c0_64 = arith.constant 0 : index
    %c0_65 = arith.constant 0 : index
    %87 = vector.load %arg5[%c5, %c0_64, %c0_65] : memref<7x21x64xbf16, #tpu.memory_space<vmem>>, vector<1x21x64xbf16>
    %88 = vector.shape_cast %87 : vector<1x21x64xbf16> to vector<21x64xbf16>
    %89 = vector.shape_cast %83 : vector<16x8x21xbf16> to vector<128x21xbf16>
    %cst_66 = arith.constant dense<0.000000e+00> : vector<128x64xf32>
    %90 = tpu.matmul %89, %88, %cst_66 {dimension_numbers = #tpu.dot_dimension_numbers<[1], [0], [0], [1], [0, 0, 1, 1], [], []>} : vector<128x21xbf16>, vector<21x64xbf16>, vector<128x64xf32> -> vector<128x64xf32>
    %91 = arith.addf %76, %90 : vector<128x64xf32>
    %92 = vector.shape_cast %86 : vector<16x8x21xbf16> to vector<128x21xbf16>
    %cst_67 = arith.constant dense<0.000000e+00> : vector<128x64xf32>
    %93 = tpu.matmul %92, %88, %cst_67 {dimension_numbers = #tpu.dot_dimension_numbers<[1], [0], [0], [1], [0, 0, 1, 1], [], []>} : vector<128x21xbf16>, vector<21x64xbf16>, vector<128x64xf32> -> vector<128x64xf32>
    %94 = arith.addf %79, %93 : vector<128x64xf32>
    %c3_i32 = arith.constant 3 : i32
    %95 = arith.addi %2, %c3_i32 : i32
    %c0_68 = arith.constant 0 : index
    %96 = arith.index_cast %95 : i32 to index
    %c0_69 = arith.constant 0 : index
    %c0_70 = arith.constant 0 : index
    %97 = vector.load %arg1[%c0_68, %96, %c0_69, %c0_70] : memref<1x19x8x21xbf16, #tpu.memory_space<vmem>>, vector<1x16x8x21xbf16>
    %98 = vector.shape_cast %97 : vector<1x16x8x21xbf16> to vector<16x8x21xbf16>
    %c0_71 = arith.constant 0 : index
    %99 = arith.index_cast %95 : i32 to index
    %c0_72 = arith.constant 0 : index
    %c0_73 = arith.constant 0 : index
    %100 = vector.load %arg2[%c0_71, %99, %c0_72, %c0_73] : memref<1x19x8x21xbf16, #tpu.memory_space<vmem>>, vector<1x16x8x21xbf16>
    %101 = vector.shape_cast %100 : vector<1x16x8x21xbf16> to vector<16x8x21xbf16>
    %c6 = arith.constant 6 : index
    %c0_74 = arith.constant 0 : index
    %c0_75 = arith.constant 0 : index
    %102 = vector.load %arg5[%c6, %c0_74, %c0_75] : memref<7x21x64xbf16, #tpu.memory_space<vmem>>, vector<1x21x64xbf16>
    %103 = vector.shape_cast %102 : vector<1x21x64xbf16> to vector<21x64xbf16>
    %104 = vector.shape_cast %98 : vector<16x8x21xbf16> to vector<128x21xbf16>
    %cst_76 = arith.constant dense<0.000000e+00> : vector<128x64xf32>
    %105 = tpu.matmul %104, %103, %cst_76 {dimension_numbers = #tpu.dot_dimension_numbers<[1], [0], [0], [1], [0, 0, 1, 1], [], []>} : vector<128x21xbf16>, vector<21x64xbf16>, vector<128x64xf32> -> vector<128x64xf32>
    %106 = arith.addf %91, %105 : vector<128x64xf32>
    %107 = vector.shape_cast %101 : vector<16x8x21xbf16> to vector<128x21xbf16>
    %cst_77 = arith.constant dense<0.000000e+00> : vector<128x64xf32>
    %108 = tpu.matmul %107, %103, %cst_77 {dimension_numbers = #tpu.dot_dimension_numbers<[1], [0], [0], [1], [0, 0, 1, 1], [], []>} : vector<128x21xbf16>, vector<21x64xbf16>, vector<128x64xf32> -> vector<128x64xf32>
    %109 = arith.addf %94, %108 : vector<128x64xf32>
    %110 = vector.broadcast %0 : vector<1x64xf32> to vector<128x64xf32>
    %111 = arith.addf %106, %110 : vector<128x64xf32>
    %cst_78 = arith.constant 0.000000e+00 : f32
    %112 = vector.broadcast %cst_78 : f32 to vector<128x64xf32>
    %113 = arith.maximumf %111, %112 : vector<128x64xf32>
    %114 = vector.shape_cast %113 : vector<128x64xf32> to vector<16x8x64xf32>
    %115 = vector.broadcast %0 : vector<1x64xf32> to vector<128x64xf32>
    %116 = arith.addf %109, %115 : vector<128x64xf32>
    %cst_79 = arith.constant 0.000000e+00 : f32
    %117 = vector.broadcast %cst_79 : f32 to vector<128x64xf32>
    %118 = arith.maximumf %116, %117 : vector<128x64xf32>
    %119 = vector.shape_cast %118 : vector<128x64xf32> to vector<16x8x64xf32>
    %120 = arith.maximumf %114, %119 : vector<16x8x64xf32>
    %cst_80 = arith.constant 0.000000e+00 : f32
    %121 = vector.broadcast %cst_80 : f32 to vector<16x1x64xf32>
    %122 = vector.extract_strided_slice %119 {offsets = [0, 0, 0], sizes = [16, 7, 64], strides = [1, 1, 1]} : vector<16x8x64xf32> to vector<16x7x64xf32>
    %123 = tpu.concatenate %121, %122 in 1 : vector<16x1x64xf32>, vector<16x7x64xf32> -> vector<16x8x64xf32>
    %124 = arith.maximumf %120, %123 : vector<16x8x64xf32>
    %125 = arith.index_cast %2 : i32 to index
    %c0_81 = arith.constant 0 : index
    %c0_82 = arith.constant 0 : index
    %126 = vector.load %arg8[%125, %c0_81, %c0_82] : memref<16x8x64xf32, #tpu.memory_space<vmem>>, vector<16x8x64xf32>
    tpu.vector_store %arg8[%125, %c0_81, %c0_82], %124 {strides = array<i32>} : memref<16x8x64xf32, #tpu.memory_space<vmem>>, vector<16x8x64xf32>,
    %c1_i32_83 = arith.constant 1 : i32
    %c0_84 = arith.constant 0 : index
    %c0_85 = arith.constant 0 : index
    %c0_86 = arith.constant 0 : index
    %127 = vector.load %arg8[%c0_84, %c0_85, %c0_86] : memref<16x8x64xf32, #tpu.memory_space<vmem>>, vector<16x8x64xf32>
    %128 = vector.shape_cast %127 : vector<16x8x64xf32> to vector<8x2x8x64xf32>
    %129 = vector.extract_strided_slice %128 {offsets = [0, 0, 0, 0], sizes = [8, 1, 8, 64], strides = [1, 1, 1, 1]} : vector<8x2x8x64xf32> to vector<8x1x8x64xf32>
    %130 = vector.shape_cast %129 : vector<8x1x8x64xf32> to vector<8x8x64xf32>
    %131 = vector.extract_strided_slice %128 {offsets = [0, 1, 0, 0], sizes = [8, 1, 8, 64], strides = [1, 1, 1, 1]} : vector<8x2x8x64xf32> to vector<8x1x8x64xf32>
    %132 = vector.shape_cast %131 : vector<8x1x8x64xf32> to vector<8x8x64xf32>
    %133 = arith.maximumf %130, %132 : vector<8x8x64xf32>
    %134 = vector.extract_strided_slice %133 {offsets = [0, 0, 0], sizes = [1, 8, 64], strides = [1, 1, 1]} : vector<8x8x64xf32> to vector<1x8x64xf32>
    %c0_87 = arith.constant 0 : index
    %c0_88 = arith.constant 0 : index
    %c0_89 = arith.constant 0 : index
    %c0_90 = arith.constant 0 : index
    %135 = vector.load %arg7[%c0_87, %c0_88, %c0_89, %c0_90] : memref<1x8x8x64xf32, #tpu.memory_space<vmem>>, vector<1x1x8x64xf32>
    %136 = vector.shape_cast %135 : vector<1x1x8x64xf32> to vector<1x8x64xf32>
    %137 = vector.shape_cast %134 : vector<1x8x64xf32> to vector<1x1x8x64xf32>
    tpu.vector_store %arg7[%c0_87, %c0_88, %c0_89, %c0_90], %137 {strides = array<i32>} : memref<1x8x8x64xf32, #tpu.memory_space<vmem>>, vector<1x1x8x64xf32>,
    %138 = vector.extract_strided_slice %133 {offsets = [1, 0, 0], sizes = [7, 8, 64], strides = [1, 1, 1]} : vector<8x8x64xf32> to vector<7x8x64xf32>
    %139 = vector.extract_strided_slice %132 {offsets = [0, 0, 0], sizes = [7, 8, 64], strides = [1, 1, 1]} : vector<8x8x64xf32> to vector<7x8x64xf32>
    %140 = arith.maximumf %138, %139 : vector<7x8x64xf32>
    %c0_91 = arith.constant 0 : index
    %c1_92 = arith.constant 1 : index
    %c0_93 = arith.constant 0 : index
    %c0_94 = arith.constant 0 : index
    %141 = vector.load %arg7[%c0_91, %c1_92, %c0_93, %c0_94] : memref<1x8x8x64xf32, #tpu.memory_space<vmem>>, vector<1x7x8x64xf32>
    %142 = vector.shape_cast %141 : vector<1x7x8x64xf32> to vector<7x8x64xf32>
    %143 = vector.shape_cast %140 : vector<7x8x64xf32> to vector<1x7x8x64xf32>
    tpu.vector_store %arg7[%c0_91, %c1_92, %c0_93, %c0_94], %143 {strides = array<i32>} : memref<1x8x8x64xf32, #tpu.memory_space<vmem>>, vector<1x7x8x64xf32>,
    return
  }
  func.func @transform_0(%arg0: i32) -> (i32, i32, i32, i32) {
    %c0_i32 = arith.constant 0 : i32
    %c0_i32_0 = arith.constant 0 : i32
    %c0_i32_1 = arith.constant 0 : i32
    %c0_i32_2 = arith.constant 0 : i32
    return %arg0, %c0_i32, %c0_i32_0, %c0_i32_1 : i32, i32, i32, i32
  }
  func.func @transform_1(%arg0: i32) -> (i32, i32, i32, i32) {
    %c0_i32 = arith.constant 0 : i32
    %c0_i32_0 = arith.constant 0 : i32
    %c0_i32_1 = arith.constant 0 : i32
    %c0_i32_2 = arith.constant 0 : i32
    return %arg0, %c0_i32, %c0_i32_0, %c0_i32_1 : i32, i32, i32, i32
  }
  func.func @transform_2(%arg0: i32) -> (i32, i32, i32, i32) {
    %c0_i32 = arith.constant 0 : i32
    %c0_i32_0 = arith.constant 0 : i32
    %c0_i32_1 = arith.constant 0 : i32
    %c0_i32_2 = arith.constant 0 : i32
    return %arg0, %c0_i32, %c0_i32_0, %c0_i32_1 : i32, i32, i32, i32
  }
  func.func @transform_3(%arg0: i32) -> (i32, i32, i32, i32) {
    %c0_i32 = arith.constant 0 : i32
    %c0_i32_0 = arith.constant 0 : i32
    %c0_i32_1 = arith.constant 0 : i32
    %c0_i32_2 = arith.constant 0 : i32
    return %arg0, %c0_i32, %c0_i32_0, %c0_i32_1 : i32, i32, i32, i32
  }
  func.func @transform_4(%arg0: i32) -> (i32, i32, i32) {
    %c0_i32 = arith.constant 0 : i32
    %c0_i32_0 = arith.constant 0 : i32
    %c0_i32_1 = arith.constant 0 : i32
    %c0_i32_2 = arith.constant 0 : i32
    return %c0_i32, %c0_i32_0, %c0_i32_1 : i32, i32, i32
  }
  func.func @transform_5(%arg0: i32) -> (i32, i32) {
    %c0_i32 = arith.constant 0 : i32
    %c0_i32_0 = arith.constant 0 : i32
    %c0_i32_1 = arith.constant 0 : i32
    return %c0_i32, %c0_i32_0 : i32, i32
  }
  func.func @transform_6(%arg0: i32) -> (i32, i32, i32, i32) {
    %c0_i32 = arith.constant 0 : i32
    %c0_i32_0 = arith.constant 0 : i32
    %c0_i32_1 = arith.constant 0 : i32
    %c0_i32_2 = arith.constant 0 : i32
    return %arg0, %c0_i32, %c0_i32_0, %c0_i32_1 : i32, i32, i32, i32
  }
}

</mosaic_0001>

<bundles_post_ra>
// kernel: tpu_custom_call.1
= control target key start
LH: loop header
LB: loop body
LE: loop exit
PB: predicated region body
PF: predicated region fallthrough
CT: control target
= control target key end

     0   :  { %s5755_s0 = inlined_call_operand.hbm [shape: bf16[2,19,8,21], index: 0, kind: input, shape index: {}]   ;;  %s5756_s1 = inlined_call_operand.hbm [shape: bf16[2,19,8,21], index: 1, kind: input, shape index: {}]   ;;  %s5757_s2 = inlined_call_operand.hbm [shape: bf16[2,18,8,21], index: 2, kind: input, shape index: {}]   ;;  %s5758_s3 = inlined_call_operand.hbm [shape: bf16[2,18,8,21], index: 3, kind: input, shape index: {}]   ;;  %s5759_s4 = inlined_call_operand.hbm [shape: bf16[7,21,64], index: 4, kind: input, shape index: {}]   ;;  %s5760_s5 = inlined_call_operand.vmem [shape: f32[1,64], index: 5, kind: input, shape index: {}]   ;;  %s5761_s6 = inlined_call_operand.hbm [shape: f32[2,8,8,64], index: 6, kind: output, shape index: {}]  }
   0x1   :  { %5773 = sst [smem:[#allocation21_spill]] %s5756_s1 }
   0x2   :  { %5774 = sst [smem:[#allocation22_spill]] %s5759_s4 }
   0x3   :  { %11 = vsyncpa [#allocation4], 0 }
   0x4   :  { %13 = vsyncpa [#allocation4 + $0x1], 0 }
   0x5   :  { %14 = vsyncpa [#allocation7], 0 }
   0x6   :  { %16 = vsyncpa [#allocation7 + $0x1], 0 }
   0x7   :  { %17 = vsyncpa [#allocation10], 0 }
   0x8   :  { %19 = vsyncpa [#allocation10 + $0x1], 0 }
   0x9   :  { %20 = vsyncpa [#allocation5], 0 }
   0xa   :  { %22 = vsyncpa [#allocation5 + $0x1], 0  ;;  %s5075_s21 = smov 0   ;;  %s5077_s22 = smov 0  }
   0xb   :  { %s5079_s23 = smov 0   ;;  %s5081_s24 = smov 0  }
   0xc LB: > { %5775 = sst [smem:[#allocation18_spill]] %s5023_s23  ;;  %s5096_s25 = sadd.s32 4294967295, %s5027_s24   ;;  %s5027_s24 = sphi %s5081_s24, %s5802_s24   ;;  %s5023_s23 = sphi %s5079_s23, %s5804_s23   ;;  %s5019_s22 = sphi %s5077_s22, %s5806_s22   ;;  %s5015_s21 = sphi %s5075_s21, %s5805_s21  }
   0xd   : > { %s3553_s26 = sadd.s32 4294967294, %s5027_s24   ;;  %s5100_s27 = sadd.s32 1, %s5027_s24  }
   0xe   : > { %5776 = sst [smem:[#allocation19_spill]] %s5100_s27  ;;  %s35_s28 = sadd.s32 1, %s5023_s23 }
   0xf   : > { %s32_s29 = ssub.s32 %s5027_s24, %s5100_s27  ;;  %p42_p0 = scmp.ne.s32.totalorder %s5023_s23, %s5019_s22 }
  0x10   : > { %p33_p1 = scmp.eq.s32.totalorder %s32_s29, 0  ;;  %p43_p2 = scmp.eq.s32.totalorder %s5027_s24, 0 }
  0x11   : > { %p48_p3 = scmp.ne.s32.totalorder %s5019_s22, %s5015_s21  ;;  %p5762_p4 = scmp.eq.s32.totalorder %s5096_s25, 0 }
  0x12   : > { %s5112_s30 = scalar_select %p33_p1, %s5023_s23, %s35_s28  }
  0x13   : > { %p5114_p5 = por %p43_p2, %p42_p0  ;;  %p5120_p6 = por %p5762_p4, %p48_p3 }
  0x14   : > { %5777 = sst [smem:[#allocation20_spill]] %s5112_s30  ;;  %p192_p7 = scmp.eq.s32.totalorder %s5096_s25, 1 }
  0x15   : > { %s5778_s7 = scalar_select %p5114_p5, 1, 0 }
  0x16   : > { %s5779_s8 = scalar_select %p5120_p6, 1, 0 }
  0x17   : > { %p198_p8 = scmp.eq.s32.totalorder %s3553_s26, 1  ;;  %p3554_p9 = scmp.ge.s32.totalorder %s5027_s24, 1 }
  0x18   : > { %p205_p10 = scmp.lt.s32.totalorder %s5027_s24, 3  ;;  %p5127_p11 = por %p192_p7, %p42_p0 }
  0x19   : > { %p5131_p12 = por %p198_p8, %p48_p3  ;;  %s5029_s12 = smov [#allocation11]  }
  0x1a   : > { %s5780_s9 = scalar_select %p5127_p11, 1, 0 }
  0x1b   : > { %s5781_s10 = scalar_select %p5131_p12, 1, 0 }
  0x1c   : > { %p5135_p13 = pnand %p3554_p9, %p205_p10  ;;  %s217_s13 = sshll.u32 %s5029_s12, 4  ;;  %s218_s13 = int_to_ptr.vmem [resolvable:$true] %s217_s13 }
  0x1d   : > { %s5150_s15 = sand.u32 1, %s5023_s23   ;;  %s5784_s4 = sld [smem:[#allocation22_spill]] }
  0x1e   : > { %s5782_s11 = scalar_select %p5135_p13, 1, 0 }
  0x1f   : > { %p4612_p1 = pneg %p5135_p13 }
  0x21   : > { %p5143_p2 = pnand %p4612_p1, %p5762_p4 }
  0x23   : > { %s4801_s19 = scalar_lea.hbm %s5784_s4, 1344  ;;  %p4803_p8 = pneg %p5143_p2 }
  0x24   : > { %p4802_p7 = scmp.ne.s32.totalorder %s5784_s4, %s4801_s19  ;;  %p4808_p1 = scmp.lt.u32.totalorder %s4801_s19, %s5784_s4 }
  0x26   : > { %p4804_p9 = pnand %p4803_p8, %p4802_p7 }
  0x28   : > { %p4805_p10 = pneg %p4804_p9 }
  0x2a   : > { %p4810_p0 = pnand %p4808_p1, %p4805_p10 }
  0x2c   : > { %4813 = shalt.err (!%p4810_p0)
}
  0x2d   : > { %s4814_s12 = scalar_lea.vmem %s218_s13, 1344  ;;  %p4822_p11 = scmp.lt.s32.totalorder %s218_s13, %s218_s13 }
  0x2e   : > { %p4815_p4 = scmp.ne.s32.totalorder %s218_s13, %s4814_s12  ;;  %p4823_p6 = scmp.lt.s32.totalorder %s4814_s12, %s4814_s12 }
  0x30   : > { %p4817_p3 = pnand %p4815_p4, %p4803_p8  ;;  %p4824_p13 = por %p4823_p6, %p4822_p11 }
  0x32   : > { %p4818_p12 = pneg %p4817_p3 }
  0x34   : > { %p4825_p5 = pnand %p4824_p13, %p4818_p12 }
  0x36   : > { %4828 = shalt.err (!%p4825_p5)
}
  0x37   : > { %s5766_s17 = smov 64   ;;  %s5031_s18 = smov 4  }
  0x38   : > { %4615 = dma.hbm_to_vmem [thread:$0]  (!%p5143_p2), %s5784_s4, 1344, %s218_s13, [#allocation10], %s5766_s17, %s5766_s17, %s5031_s18  }
  0x39   : > { %s5768_s26 = smul.u32 1216, %s5027_s24  ;;  %p5785_p4 = scmp.ne.s32.totalorder %s5778_s7, 0 }
  0x3a   : > { %p5786_p5 = scmp.lt.s32.totalorder %s5027_s24, 2  ;;  %s5769_s29 = sand.u32 1, %s5027_s24  }
  0x3b   : > { %s5788_s1 = sld [smem:[#allocation21_spill]]  ;;  %s5789_s30 = smul.u32 76, %s5150_s15 }
  0x3c   : > { %p5177_p6 = pnand %p5786_p5, %p5785_p4  ;;  %s5195_s19 = scalar_lea.sflag [#allocation7], %s5769_s29 }
  0x3d   : > { %s259_s13 = scalar_lea.vmem [#allocation6], %s5789_s30 }
  0x3e   : > { %s266_s7 = sshll.u32 %s259_s13, 4  ;;  %p5201_p12 = pneg %p5177_p6  ;;  %s5191_s7 = int_to_ptr.vmem [resolvable:$true] %s266_s7 }
  0x41   : > { %s5187_s14 = scalar_lea.hbm %s5788_s1, %s5768_s26  ;;  %s4834_s30 = scalar_lea.hbm %s5788_s1, 2432 }
  0x42   : > { %s4829_s20 = scalar_lea.hbm %s5187_s14, 1216  ;;  %p4835_p0 = scmp.lt.u32.totalorder %s5187_s14, %s5788_s1 }
  0x43   : > { %p4830_p11 = scmp.ne.s32.totalorder %s5187_s14, %s4829_s20  ;;  %p4836_p3 = scmp.lt.u32.totalorder %s4834_s30, %s4829_s20 }
  0x44   : > { %p4838_p8 = scmp.lt.u32.totalorder %s4829_s20, %s5187_s14 }
  0x45   : > { %p4832_p13 = pnand %p5201_p12, %p4830_p11  ;;  %p4837_p7 = por %p4836_p3, %p4835_p0 }
  0x47   : > { %p4833_p2 = pneg %p4832_p13  ;;  %p4839_p9 = por %p4838_p8, %p4837_p7 }
  0x49   : > { %p4840_p10 = pnand %p4839_p9, %p4833_p2 }
  0x4b   : > { %4843 = shalt.err (!%p4840_p10)
}
  0x4c   : > { %s4844_s29 = scalar_lea.vmem %s5191_s7, 1216  ;;  %s5032_s16 = smov [#allocation6]  }
  0x4d   : > { %p4845_p1 = scmp.ne.s32.totalorder %s5191_s7, %s4844_s29  ;;  %s4849_s12 = sshll.u32 %s5032_s16, 4  ;;  %s4850_s12 = int_to_ptr.vmem [resolvable:$false] %s4849_s12 }
  0x4e   : > { %s4851_s26 = scalar_lea.vmem %s4850_s12, 2432  ;;  %p4852_p11 = scmp.lt.s32.totalorder %s5191_s7, %s4850_s12 }
  0x4f   : > { %p4847_p4 = pnand %p4845_p1, %p5201_p12  ;;  %p4853_p13 = scmp.lt.s32.totalorder %s4851_s26, %s4844_s29 }
  0x51   : > { %p4848_p5 = pneg %p4847_p4  ;;  %p4854_p0 = por %p4853_p13, %p4852_p11 }
  0x53   : > { %p4855_p3 = pnand %p4854_p0, %p4848_p5 }
  0x55   : > { %4858 = shalt.err (!%p4855_p3)
}
  0x56   : > { %s5791_s20 = smov 64   ;;  %s5792_s30 = smul.u32 1216, %s5027_s24 }
  0x57   : > { %4622 = dma.hbm_to_vmem [thread:$0]  (!%p5177_p6), %s5187_s14, 1216, %s5191_s7, %s5195_s19, %s5791_s20, %s5791_s20, %s5031_s18  }
  0x58   : > { %s5233_s16 = scalar_lea.hbm %s5755_s0, %s5792_s30  ;;  %s5793_s12 = smul.u32 76, %s5150_s15 }
  0x59   : > { %s4592_s4 = smul.u32 72, %s5150_s15  ;;  %s235_s23 = scalar_lea.sflag [#allocation4], %s5150_s15 }
  0x5a   : > { %s238_s26 = scalar_lea.vmem [#allocation3], %s5793_s12  ;;  %s4859_s27 = scalar_lea.hbm %s5233_s16, 1216 }
  0x5b   : > { %s245_s1 = sshll.u32 %s238_s26, 4  ;;  %p4860_p2 = scmp.ne.s32.totalorder %s5233_s16, %s4859_s27  ;;  %s5237_s1 = int_to_ptr.vmem [resolvable:$true] %s245_s1 }
  0x5c   : > { %s4864_s30 = scalar_lea.hbm %s5755_s0, 2432  ;;  %p4865_p9 = scmp.lt.u32.totalorder %s5233_s16, %s5755_s0 }
  0x5d   : > { %p4862_p7 = pnand %p4860_p2, %p5201_p12  ;;  %p4866_p10 = scmp.lt.u32.totalorder %s4864_s30, %s4859_s27 }
  0x5e   : > { %p4868_p4 = scmp.lt.u32.totalorder %s4859_s27, %s5233_s16 }
  0x5f   : > { %p4863_p8 = pneg %p4862_p7  ;;  %p4867_p1 = por %p4866_p10, %p4865_p9 }
  0x61   : > { %p4869_p5 = por %p4868_p4, %p4867_p1 }
  0x63   : > { %p4870_p11 = pnand %p4869_p5, %p4863_p8 }
  0x65   : > { %4873 = shalt.err (!%p4870_p11)
}
  0x66   : > { %s4874_s12 = scalar_lea.vmem %s5237_s1, 1216  ;;  %s5033_s26 = smov [#allocation3]  }
  0x67   : > { %p4875_p13 = scmp.ne.s32.totalorder %s5237_s1, %s4874_s12  ;;  %s4879_s14 = sshll.u32 %s5033_s26, 4  ;;  %s4880_s14 = int_to_ptr.vmem [resolvable:$false] %s4879_s14 }
  0x68   : > { %s4881_s7 = scalar_lea.vmem %s4880_s14, 2432  ;;  %p4882_p2 = scmp.lt.s32.totalorder %s5237_s1, %s4880_s14 }
  0x69   : > { %p4877_p0 = pnand %p4875_p13, %p5201_p12  ;;  %p4883_p7 = scmp.lt.s32.totalorder %s4881_s7, %s4874_s12 }
  0x6b   : > { %p4878_p3 = pneg %p4877_p0  ;;  %p4884_p9 = por %p4883_p7, %p4882_p2 }
  0x6d   : > { %p4885_p10 = pnand %p4884_p9, %p4878_p3 }
  0x6f   : > { %4888 = shalt.err (!%p4885_p10)
}
  0x70   : > { %4619 = dma.hbm_to_vmem [thread:$0]  (!%p5177_p6), %s5233_s16, 1216, %s5237_s1, %s235_s23, %s5791_s20, %s5791_s20, %s5031_s18  }
  0x71   : > { %s4593_s27 = smul.u32 1152, %s5027_s24  ;;  %s280_s30 = scalar_lea.vmem [#allocation8], %s4592_s4 }
  0x72   : > { %s287_s13 = sshll.u32 %s280_s30, 4  ;;  %s4894_s16 = scalar_lea.hbm %s5757_s2, 2304  ;;  %s5277_s13 = int_to_ptr.vmem [resolvable:$true] %s287_s13 }
  0x73   : > { %s5275_s26 = scalar_lea.hbm %s5757_s2, %s4593_s27 }
  0x74   : > { %s4889_s14 = scalar_lea.hbm %s5275_s26, 1152  ;;  %p4895_p5 = scmp.lt.u32.totalorder %s5275_s26, %s5757_s2 }
  0x75   : > { %p4890_p8 = scmp.ne.s32.totalorder %s5275_s26, %s4889_s14  ;;  %p4896_p11 = scmp.lt.u32.totalorder %s4894_s16, %s4889_s14 }
  0x76   : > { %p4898_p0 = scmp.lt.u32.totalorder %s4889_s14, %s5275_s26 }
  0x77   : > { %p4892_p1 = pnand %p4890_p8, %p5201_p12  ;;  %p4897_p13 = por %p4896_p11, %p4895_p5 }
  0x79   : > { %p4893_p4 = pneg %p4892_p1  ;;  %p4899_p3 = por %p4898_p0, %p4897_p13 }
  0x7b   : > { %p4900_p2 = pnand %p4899_p3, %p4893_p4 }
  0x7d   : > { %4903 = shalt.err (!%p4900_p2)
}
  0x7e   : > { %s4904_s29 = scalar_lea.vmem %s5277_s13, 1152  ;;  %s5034_s12 = smov [#allocation8]  }
  0x7f   : > { %p4905_p7 = scmp.ne.s32.totalorder %s5277_s13, %s4904_s29  ;;  %s4909_s1 = sshll.u32 %s5034_s12, 4  ;;  %s4910_s1 = int_to_ptr.vmem [resolvable:$false] %s4909_s1 }
  0x80   : > { %s4911_s23 = scalar_lea.vmem %s4910_s1, 2304  ;;  %p4912_p8 = scmp.lt.s32.totalorder %s5277_s13, %s4910_s1 }
  0x81   : > { %p4907_p9 = pnand %p4905_p7, %p5201_p12  ;;  %p4913_p1 = scmp.lt.s32.totalorder %s4911_s23, %s4904_s29 }
  0x83   : > { %p4908_p10 = pneg %p4907_p9  ;;  %p4914_p5 = por %p4913_p1, %p4912_p8 }
  0x85   : > { %p4915_p11 = pnand %p4914_p5, %p4908_p10 }
  0x87   : > { %4918 = shalt.err (!%p4915_p11)
}
  0x88   : > { %4625 = dma.hbm_to_vmem [thread:$0]  (!%p5177_p6), %s5275_s26, 1152, %s5277_s13, %s5195_s19, %s5791_s20, %s5791_s20, %s5031_s18  }
  0x89   : > { %s5309_s7 = scalar_lea.hbm %s5758_s3, %s4593_s27  ;;  %s301_s30 = scalar_lea.vmem [#allocation9], %s4592_s4 }
  0x8a   : > { %s308_s29 = sshll.u32 %s301_s30, 4  ;;  %s5794_s12 = sand.u32 1, %s5027_s24   ;;  %s5313_s29 = int_to_ptr.vmem [resolvable:$true] %s308_s29 }
  0x8b   : > { %s5317_s1 = scalar_lea.sflag [#allocation10], %s5794_s12  ;;  %s4919_s23 = scalar_lea.hbm %s5309_s7, 1152 }
  0x8c   : > { %p4920_p4 = scmp.ne.s32.totalorder %s5309_s7, %s4919_s23  ;;  %s4924_s15 = scalar_lea.hbm %s5758_s3, 2304 }
  0x8d   : > { %p4925_p3 = scmp.lt.u32.totalorder %s5309_s7, %s5758_s3  ;;  %p4926_p2 = scmp.lt.u32.totalorder %s4924_s15, %s4919_s23 }
  0x8e   : > { %p4922_p13 = pnand %p4920_p4, %p5201_p12  ;;  %p4928_p9 = scmp.lt.u32.totalorder %s4919_s23, %s5309_s7 }
  0x8f   : > { %p4927_p7 = por %p4926_p2, %p4925_p3 }
  0x90   : > { %p4923_p0 = pneg %p4922_p13 }
  0x91   : > { %p4929_p10 = por %p4928_p9, %p4927_p7 }
  0x93   : > { %p4930_p8 = pnand %p4929_p10, %p4923_p0 }
  0x95   : > { %4933 = shalt.err (!%p4930_p8)
}
  0x96   : > { %s4934_s4 = scalar_lea.vmem %s5313_s29, 1152  ;;  %s5035_s14 = smov [#allocation9]  }
  0x97   : > { %p4935_p1 = scmp.ne.s32.totalorder %s5313_s29, %s4934_s4  ;;  %s4939_s16 = sshll.u32 %s5035_s14, 4  ;;  %s4940_s16 = int_to_ptr.vmem [resolvable:$false] %s4939_s16 }
  0x98   : > { %s4941_s30 = scalar_lea.vmem %s4940_s16, 2304  ;;  %p4942_p4 = scmp.lt.s32.totalorder %s5313_s29, %s4940_s16 }
  0x99   : > { %p4937_p5 = pnand %p4935_p1, %p5201_p12  ;;  %p4943_p13 = scmp.lt.s32.totalorder %s4941_s30, %s4934_s4 }
  0x9b   : > { %p4938_p11 = pneg %p4937_p5  ;;  %p4944_p3 = por %p4943_p13, %p4942_p4 }
  0x9d   : > { %p4945_p2 = pnand %p4944_p3, %p4938_p11 }
  0x9f   : > { %4948 = shalt.err (!%p4945_p2)
}
  0xa0   : > { %4628 = dma.hbm_to_vmem [thread:$0]  (!%p5177_p6), %s5309_s7, 1152, %s5313_s29, %s5317_s1, %s5791_s20, %s5791_s20, %s5031_s18  }
  0xa1   : > { %p5795_p12 = scmp.ne.s32.totalorder %s5782_s11, 0 }
  0xa2   : > { %s5347_s17 = sand.u32 (!%p5795_p12), 1, %s5019_s22   ;;  %p5796_p0 = scmp.ne.s32.totalorder (!%p5795_p12), %s5779_s8, 0 }
  0xa3   : > { %320 = sbr.rel (%p5795_p12) target bundleno = 662 (0x296), region = 44  ;;  %s323_s23 = scalar_lea.sflag (!%p5795_p12), [#allocation4], %s5347_s17 }
  0xa4   : > { %s4596_s12 = smul.u32 (!%p5795_p12), 76, %s5347_s17 }
  0xa6   : > { %s5351_s19 = scalar_lea.vmem (!%p5795_p12), [#allocation3], %s4596_s12 }
  0xaa   : > { %4994 = dma.done.wait (%p5796_p0), %s323_s23, 1216  }
  0xab   : > { %4996 = vsyncadd (%p5796_p0), %s323_s23, 4294966080  ;;  %s331_s18 = sand.u32 1, %s5096_s25   ;;  %s5358_s28 = scalar_lea.vmem [#allocation6], %s4596_s12 }
  0xac   : > { %s332_s11 = scalar_lea.sflag [#allocation7], %s331_s18 }
  0xad   : > { %4998 = dma.done.wait (%p5796_p0), %s332_s11, 2368  }
  0xae   : > { %5000 = vsyncadd (%p5796_p0), %s332_s11, 4294964928  ;;  %s4597_s20 = smul.u32 72, %s5347_s17  ;;  %s350_s29 = scalar_lea.sflag [#allocation10], %s331_s18 }
  0xb0   : > { %s5365_s7 = scalar_lea.vmem [#allocation8], %s4597_s20  ;;  %s5367_s1 = scalar_lea.vmem [#allocation9], %s4597_s20 }
  0xb1   : > { %5002 = dma.done.wait (%p5796_p0), %s350_s29, 1152  }
  0xb2   : > { %5004 = vsyncadd (%p5796_p0), %s350_s29, 4294966144  ;;  %p5797_p6 = scmp.eq.s32.totalorder %s5096_s25, 0 }
  0xb4   : > { %5006 = dma.done.wait (%p5797_p6), [#allocation10], 1344   ;;  %p5798_p7 = pmov %p5797_p6 }
  0xb5   : > { %vm548_vm0 = vcmask 1041408   ;;  %vm549_vm1 = vcmask 1042432   ;;  %v5036_v0 = vmov 65535   ;;  %vm523_vm2 = vcmask 171008   ;;  %v4675_v2 = vld [vmem:[#allocation11 + $0xc] sm:$0xff]   ;;  %v4680_v9 = vld [vmem:[%s5367_s1 + $0x8] sm:$0xff]  }
  0xb6   : > { %5008 = vsyncadd (%p5798_p7), [#allocation10], 4294965952  ;;  %v550_v1 = vsel %vm548_vm0, 4294967295, %v5036_v0  ;;  %v4676_v4 = vld [vmem:[#allocation11 + $0x14] ss:$0 sps:$4 sm:$0x77]   ;;  %4116 = vmatprep.subr.bf16.mxu0 %v4675_v2  ;;  %4156 = vmatprep.subr.bf16.mxu1 %v4675_v2 }
  0xb7   : > { %v5377_v3 = vsel %vm549_vm1, %v550_v1, 0  ;;  %v4677_v5 = vld [vmem:[%s5365_s7] sm:$0xff]   ;;  %4117 = vmatpush3.bf16.msra.mxu0 %v4675_v2  ;;  %4157 = vmatpush3.bf16.msra.mxu1 %v4675_v2  ;;  %v4678_v7 = vld [vmem:[%s5367_s1] sm:$0xff]   ;;  %v4679_v8 = vld [vmem:[%s5365_s7 + $0x8] sm:$0xff]   ;;  %vm3301_vm3 = vcmask 1040384   ;;  %vm3334_vm4 = vcmask 523264  }
  0xb8   : > { %v553_v6 = vand.u32 %v4676_v4, %v5377_v3  ;;  %4120 = vmatprep.mubr.msk.bf16.mxu0 %vm523_vm2, %v4677_v5  ;;  %4160 = vmatprep.mubr.msk.bf16.mxu1 %vm523_vm2, %v4678_v7  ;;  %v4681_v10 = vld [vmem:[#allocation11] sm:$0xff]   ;;  %v4682_v11 = vld [vmem:[%s5365_s7 + $0x10] sm:$0xff]   ;;  %v4685_v14 = vld [vmem:[%s5367_s1 + $0x18] sm:$0xff]   ;;  %s3563_s15 = sshll.u32 %s5347_s17, 6  ;;  %s3975_s26 = sshll.u32 %s5096_s25, 10 }
  0xb9   : > { %v4683_v12 = vld [vmem:[%s5367_s1 + $0x10] sm:$0xff]   ;;  %v4684_v13 = vld [vmem:[%s5365_s7 + $0x18] sm:$0xff]   ;;  %v4687_v16 = vld [vmem:[%s5367_s1 + $0x20] sm:$0xff]   ;;  %s5661_s13 = scalar_lea.vmem [#allocation12], %s3563_s15  ;;  %s5705_s30 = scalar_lea.hbm %s5761_s6, %s3975_s26 }
  0xba   : > { %4118 = vmatprep.subr.bf16.mxu0 %v553_v6  ;;  %4158 = vmatprep.subr.bf16.mxu1 %v553_v6  ;;  %v4686_v15 = vld [vmem:[%s5365_s7 + $0x20] sm:$0xff]   ;;  %v4688_v19 = vld [vmem:[%s5365_s7 + $0x28] sm:$0xff]   ;;  %v4689_v20 = vld [vmem:[%s5367_s1 + $0x28] sm:$0xff]   ;;  %s3405_s4 = sshll.u32 %s5661_s13, 4  ;;  %s3392_s25 = scalar_lea.sflag [#allocation5], %s5347_s17  ;;  %s5707_s4 = int_to_ptr.vmem [resolvable:$true] %s3405_s4 }
  0xbb   : > { %4119 = vmatpush3.bf16.msra.mxu0 %v553_v6  ;;  %4159 = vmatpush3.bf16.msra.mxu1 %v553_v6  ;;  %v4690_v17 = vld [vmem:[#allocation11 + $0x8] ss:$0 sps:$4 sm:$0x77]   ;;  %v4691_v21 = vld [vmem:[%s5365_s7 + $0x30] sm:$0xff]   ;;  %v4693_v24 = vld [vmem:[%s5365_s7 + $0x38] sm:$0xff]   ;;  %s4949_s12 = scalar_lea.vmem %s5707_s4, 1024 }
  0xbc   : > { %4176 = vmatprep.subr.bf16.mxu1 %v4681_v10  ;;  %4136 = vmatprep.subr.bf16.mxu0 %v4681_v10  ;;  %v726_v18 = vand.u32 %v4690_v17, %v5377_v3  ;;  %v4692_v22 = vld [vmem:[%s5367_s1 + $0x30] sm:$0xff]   ;;  %v4699_v23 = vld [vmem:[#allocation11 + $0x18] sm:$0xff]   ;;  %v4694_v25 = vld [vmem:[%s5367_s1 + $0x38] sm:$0xff]   ;;  %p4950_p9 = scmp.ne.s32.totalorder %s5707_s4, %s4949_s12  ;;  %p5799_p10 = scmp.ne.s32.totalorder %s5780_s9, 0 }
  0xbd   : > { %v4695_v26 = vld [vmem:[%s5351_s19] sm:$0xff]   ;;  %v4696_v27 = vld [vmem:[%s5358_s28] sm:$0xff]   ;;  %v4697_v29 = vld [vmem:[%s5351_s19 + $0x8] sm:$0xff]   ;;  %s5037_s23 = smov [#allocation12]  }
  0xbe   : > { %4121 = vmatmul.mubr.msk.bf16.vlgmr.msra.gmra.mrb[0].mxu0 %vm523_vm2, %v4679_v8  ;;  %4161 = vmatmul.mubr.msk.bf16.vlgmr.msra.gmra.mrb[0].mxu1 %vm523_vm2, %v4680_v9  ;;  %v4708_v28 = vld [vmem:[#allocation11 + $0x20] ss:$0 sps:$4 sm:$0x77]   ;;  %v4701_v32 = vld [vmem:[%s5358_s28 + $0x10] sm:$0xff]   ;;  %v4702_v34 = vld [vmem:[%s5351_s19 + $0x18] sm:$0xff]   ;;  %p4951_p8 = pnand %p4950_p9, %p5799_p10 }
  0xbf   : > { %4177 = vmatpush3.bf16.msra.mxu1 %v4681_v10  ;;  %4137 = vmatpush3.bf16.msra.mxu0 %v4681_v10  ;;  %v4698_v30 = vld [vmem:[%s5358_s28 + $0x8] sm:$0xff]   ;;  %v4700_v31 = vld [vmem:[%s5351_s19 + $0x10] sm:$0xff]   ;;  %v1259_v33 = vand.u32 %v4708_v28, %v5377_v3  ;;  %v4705_v38 = vld [vmem:[%s5358_s28 + $0x20] sm:$0xff]  }
  0xc0   : > { %4124 = vmatprep.mubr.msk.bf16.mxu0 %vm523_vm2, %v4682_v11  ;;  %4164 = vmatprep.mubr.msk.bf16.mxu1 %vm523_vm2, %v4683_v12  ;;  %v4717_v35 = vld [vmem:[#allocation11 + $0x24] sm:$0xff]   ;;  %v4704_v37 = vld [vmem:[%s5351_s19 + $0x20] sm:$0xff]   ;;  %v4726_v48 = vld [vmem:[#allocation11 + $0x2c] ss:$0 sps:$4 sm:$0x77]   ;;  %p4952_p1 = pneg %p4951_p8 }
  0xc1   : > { %4178 = vmatprep.subr.bf16.mxu1 %v726_v18  ;;  %4138 = vmatprep.subr.bf16.mxu0 %v726_v18  ;;  %v4703_v36 = vld [vmem:[%s5358_s28 + $0x18] sm:$0xff]   ;;  %v4706_v39 = vld [vmem:[%s5351_s19 + $0x28] sm:$0xff]   ;;  %v4707_v40 = vld [vmem:[%s5358_s28 + $0x28] sm:$0xff]   ;;  %v1663_v52 = vand.u32 %v4726_v48, %v5377_v3 }
  0xc2   : > { %v4709_v41 = vld [vmem:[%s5351_s19 + $0x30] sm:$0xff]   ;;  %v4710_v42 = vld [vmem:[%s5358_s28 + $0x30] sm:$0xff]   ;;  %v4711_v43 = vld [vmem:[%s5351_s19 + $0x38] sm:$0xff]  }
  0xc3   : > { %4179 = vmatpush3.bf16.msra.mxu1 %v726_v18  ;;  %4139 = vmatpush3.bf16.msra.mxu0 %v726_v18  ;;  %v4712_v44 = vld [vmem:[%s5358_s28 + $0x38] sm:$0xff]   ;;  %v4713_v45 = vld [vmem:[%s5351_s19 + $0x4] sm:$0xff]   ;;  %v4714_v46 = vld [vmem:[%s5358_s28 + $0x4] sm:$0xff]  }
  0xc4   : > { %4216 = vmatprep.subr.bf16.mxu1 %v4699_v23  ;;  %4196 = vmatprep.subr.bf16.mxu0 %v4699_v23  ;;  %v4715_v47 = vld [vmem:[%s5351_s19 + $0xc] sm:$0xff]   ;;  %v4716_v49 = vld [vmem:[%s5358_s28 + $0xc] sm:$0xff]   ;;  %v4718_v50 = vld [vmem:[%s5351_s19 + $0x14] sm:$0xff]  }
  0xc5   : > { %v4719_v51 = vld [vmem:[%s5358_s28 + $0x14] sm:$0xff]   ;;  %v4720_v53 = vld [vmem:[%s5351_s19 + $0x1c] sm:$0xff]   ;;  %v4721_v55 = vld [vmem:[%s5358_s28 + $0x1c] sm:$0xff]  }
  0xc6   : > { %4125 = vmatmul.mubr.msk.bf16.gmra.mrb[4].mxu0 %vm523_vm2, %v4684_v13  ;;  %4165 = vmatmul.mubr.msk.bf16.gmra.mrb[4].mxu1 %vm523_vm2, %v4685_v14  ;;  %v4735_v54 = vld [vmem:[#allocation11 + $0x30] sm:$0xff]   ;;  %v4724_v58 = vld [vmem:[%s5351_s19 + $0x2c] sm:$0xff]   ;;  %v4744_v2 = vld [vmem:[#allocation11 + $0x38] ss:$0 sps:$4 sm:$0x77]  }
  0xc7   : > { %4128 = vmatprep.mubr.msk.bf16.mxu0 %vm523_vm2, %v4686_v15  ;;  %4168 = vmatprep.mubr.msk.bf16.mxu1 %vm523_vm2, %v4687_v16  ;;  %v4722_v56 = vld [vmem:[%s5351_s19 + $0x24] sm:$0xff]   ;;  %v4723_v57 = vld [vmem:[%s5358_s28 + $0x24] sm:$0xff]   ;;  %v4727_v60 = vld [vmem:[%s5351_s19 + $0x34] sm:$0xff]   ;;  %v2067_v8 = vand.u32 %v4744_v2, %v5377_v3 }
  0xc8   : > { %v4725_v59 = vld [vmem:[%s5358_s28 + $0x2c] sm:$0xff]   ;;  %v4728_v61 = vld [vmem:[%s5358_s28 + $0x34] sm:$0xff]   ;;  %v4729_v62 = vld [vmem:[%s5351_s19 + $0x3c] sm:$0xff]  }
  0xc9   : > { %v4730_v63 = vld [vmem:[%s5358_s28 + $0x3c] sm:$0xff]   ;;  %v4732_v1 = vld [vmem:[%s5367_s1 + $0x4] sm:$0xff]   ;;  %v4734_v5 = vld [vmem:[%s5367_s1 + $0xc] sm:$0xff]  }
  0xca   : > { %v4731_v0 = vld [vmem:[%s5365_s7 + $0x4] sm:$0xff]   ;;  %v4733_v4 = vld [vmem:[%s5365_s7 + $0xc] sm:$0xff]   ;;  %v4736_v6 = vld [vmem:[%s5365_s7 + $0x14] sm:$0xff]  }
  0xcb   : > { %v4737_v7 = vld [vmem:[%s5367_s1 + $0x14] sm:$0xff]   ;;  %v4738_v9 = vld [vmem:[%s5365_s7 + $0x1c] sm:$0xff]   ;;  %v4739_v11 = vld [vmem:[%s5367_s1 + $0x1c] sm:$0xff]  }
  0xcc   : > { %v4753_v10 = vld [vmem:[#allocation11 + $0x3c] sm:$0xff]   ;;  %v4740_v12 = vld [vmem:[%s5365_s7 + $0x24] sm:$0xff]   ;;  %v4742_v14 = vld [vmem:[%s5365_s7 + $0x2c] sm:$0xff]  }
  0xcd   : > { %v4741_v13 = vld [vmem:[%s5367_s1 + $0x24] sm:$0xff]   ;;  %v4743_v15 = vld [vmem:[%s5367_s1 + $0x2c] sm:$0xff]   ;;  %v4746_v17 = vld [vmem:[%s5367_s1 + $0x34] sm:$0xff]  }
  0xce   : > { %4129 = vmatmul.mubr.msk.bf16.gmra.mrb[8].mxu0 %vm523_vm2, %v4688_v19  ;;  %4169 = vmatmul.mubr.msk.bf16.gmra.mrb[8].mxu1 %vm523_vm2, %v4689_v20  ;;  %v4745_v16 = vld [vmem:[%s5365_s7 + $0x34] sm:$0xff]   ;;  %v4747_v18 = vld [vmem:[%s5365_s7 + $0x3c] sm:$0xff]   ;;  %v4748_v19 = vld [vmem:[%s5367_s1 + $0x3c] sm:$0xff]  }
  0xcf   : > { %4132 = vmatprep.mubr.msk.bf16.mxu0 %vm523_vm2, %v4691_v21  ;;  %4172 = vmatprep.mubr.msk.bf16.mxu1 %vm523_vm2, %v4692_v22  ;;  %v4749_v20 = vld [vmem:[%s5351_s19 + $0x8] sm:$0xff]   ;;  %v4750_v21 = vld [vmem:[%s5358_s28 + $0x8] sm:$0xff]   ;;  %v4795_v2 = vld [vmem:[%s5351_s19 + $0x34] sm:$0xff]  }
  0xd0   : > { %v4762_v22 = vld [vmem:[#allocation11 + $0x44] ss:$0 sps:$4 sm:$0x77]   ;;  %v4771_v28 = vld [vmem:[#allocation11 + $0x48] sm:$0xff]   ;;  %v4775_v48 = vld [vmem:[%s5367_s1 + $0x20] sm:$0xff]  }
  0xd6   : > { %4133 = vmatmul.mubr.msk.bf16.gmra.mrb[12].mxu0 %vm523_vm2, %v4693_v24  ;;  %4173 = vmatmul.mubr.msk.bf16.gmra.mrb[12].mxu1 %vm523_vm2, %v4694_v25  ;;  %v4752_v24 = vld [vmem:[%s5358_s28 + $0x10] sm:$0xff]   ;;  %v4754_v25 = vld [vmem:[%s5351_s19 + $0x18] sm:$0xff]  }
  0xd7   : > { %4140 = vmatprep.mubr.msk.bf16.mxu0 %vm523_vm2, %v4695_v26  ;;  %4180 = vmatprep.mubr.msk.bf16.mxu1 %vm523_vm2, %v4696_v27  ;;  %v4755_v26 = vld [vmem:[%s5358_s28 + $0x18] sm:$0xff]   ;;  %v2471_v27 = vand.u32 %v4762_v22, %v5377_v3 }
  0xde   : > { %4141 = vmatmul.mubr.msk.bf16.vlgmr.msra.gmra.mrb[0].mxu0 %vm523_vm2, %v4697_v29  ;;  %4181 = vmatmul.mubr.msk.bf16.vlgmr.msra.gmra.mrb[0].mxu1 %vm523_vm2, %v4698_v30  ;;  %v4756_v29 = vld [vmem:[%s5351_s19 + $0x20] sm:$0xff]   ;;  %v4757_v30 = vld [vmem:[%s5358_s28 + $0x20] sm:$0xff]  }
  0xdf   : > { %4217 = vmatpush3.bf16.msra.mxu1 %v4699_v23  ;;  %4197 = vmatpush3.bf16.msra.mxu0 %v4699_v23  ;;  %v4751_v23 = vld [vmem:[%s5351_s19 + $0x10] sm:$0xff]  }
  0xe0   : > { %4144 = vmatprep.mubr.msk.bf16.mxu0 %vm523_vm2, %v4700_v31  ;;  %4184 = vmatprep.mubr.msk.bf16.mxu1 %vm523_vm2, %v4701_v32  ;;  %v4758_v31 = vld [vmem:[%s5351_s19 + $0x28] sm:$0xff]   ;;  %v4759_v32 = vld [vmem:[%s5358_s28 + $0x28] sm:$0xff]  }
  0xe1   : > { %4218 = vmatprep.subr.bf16.mxu1 %v1259_v33  ;;  %4198 = vmatprep.subr.bf16.mxu0 %v1259_v33 }
  0xe3   : > { %4219 = vmatpush3.bf16.msra.mxu1 %v1259_v33  ;;  %4199 = vmatpush3.bf16.msra.mxu0 %v1259_v33  ;;  %v4760_v33 = vld [vmem:[%s5351_s19 + $0x30] sm:$0xff]  }
  0xe4   : > { %4256 = vmatprep.subr.bf16.mxu1 %v4717_v35  ;;  %4236 = vmatprep.subr.bf16.mxu0 %v4717_v35 }
  0xe6   : > { %4145 = vmatmul.mubr.msk.bf16.gmra.mrb[4].mxu0 %vm523_vm2, %v4702_v34  ;;  %4185 = vmatmul.mubr.msk.bf16.gmra.mrb[4].mxu1 %vm523_vm2, %v4703_v36  ;;  %v4761_v34 = vld [vmem:[%s5358_s28 + $0x30] sm:$0xff]   ;;  %v4764_v36 = vld [vmem:[%s5358_s28 + $0x38] sm:$0xff]  }
  0xe7   : > { %4148 = vmatprep.mubr.msk.bf16.mxu0 %vm523_vm2, %v4704_v37  ;;  %4188 = vmatprep.mubr.msk.bf16.mxu1 %vm523_vm2, %v4705_v38  ;;  %v4765_v37 = vld [vmem:[%s5351_s19 + $0x40] sm:$0xff]   ;;  %v4766_v38 = vld [vmem:[%s5358_s28 + $0x40] sm:$0xff]  }
  0xee   : > { %4149 = vmatmul.mubr.msk.bf16.gmra.mrb[8].mxu0 %vm523_vm2, %v4706_v39  ;;  %4189 = vmatmul.mubr.msk.bf16.gmra.mrb[8].mxu1 %vm523_vm2, %v4707_v40  ;;  %v4767_v39 = vld [vmem:[%s5365_s7 + $0x8] sm:$0xff]   ;;  %v4768_v40 = vld [vmem:[%s5367_s1 + $0x8] sm:$0xff]  }
  0xef   : > { %4152 = vmatprep.mubr.msk.bf16.mxu0 %vm523_vm2, %v4709_v41  ;;  %4192 = vmatprep.mubr.msk.bf16.mxu1 %vm523_vm2, %v4710_v42  ;;  %v4780_v41 = vld [vmem:[#allocation11 + $0x50] ss:$0 sps:$4 sm:$0x77]  }
  0xf0   : > { %v4769_v42 = vld [vmem:[%s5365_s7 + $0x10] sm:$0xff]  }
  0xf6   : > { %4153 = vmatmul.mubr.msk.bf16.gmra.mrb[12].mxu0 %vm523_vm2, %v4711_v43  ;;  %4193 = vmatmul.mubr.msk.bf16.gmra.mrb[12].mxu1 %vm523_vm2, %v4712_v44  ;;  %v4770_v43 = vld [vmem:[%s5367_s1 + $0x10] sm:$0xff]   ;;  %v4772_v44 = vld [vmem:[%s5365_s7 + $0x18] sm:$0xff]  }
  0xf7   : > { %4200 = vmatprep.mubr.msk.bf16.mxu0 %vm523_vm2, %v4713_v45  ;;  %4220 = vmatprep.mubr.msk.bf16.mxu1 %vm523_vm2, %v4714_v46  ;;  %v4773_v45 = vld [vmem:[%s5367_s1 + $0x18] sm:$0xff]   ;;  %v2875_v46 = vand.u32 %v4780_v41, %v5377_v3  ;;  %v4777_v3 = vld [vmem:[%s5367_s1 + $0x28] sm:$0xff]  }
  0xfe   : > { %4201 = vmatmul.mubr.msk.bf16.vlgmr.msra.gmra.mrb[0].mxu0 %vm523_vm2, %v4715_v47  ;;  %4221 = vmatmul.mubr.msk.bf16.vlgmr.msra.gmra.mrb[0].mxu1 %vm523_vm2, %v4716_v49  ;;  %v4774_v47 = vld [vmem:[%s5365_s7 + $0x20] sm:$0xff]   ;;  %v4776_v49 = vld [vmem:[%s5365_s7 + $0x28] sm:$0xff]  }
  0xff   : > { %4257 = vmatpush3.bf16.msra.mxu1 %v4717_v35  ;;  %4237 = vmatpush3.bf16.msra.mxu0 %v4717_v35  ;;  %v4763_v35 = vld [vmem:[%s5351_s19 + $0x38] sm:$0xff]  }
 0x100   : > { %4204 = vmatprep.mubr.msk.bf16.mxu0 %vm523_vm2, %v4718_v50  ;;  %4224 = vmatprep.mubr.msk.bf16.mxu1 %vm523_vm2, %v4719_v51  ;;  %v4778_v50 = vld [vmem:[%s5365_s7 + $0x30] sm:$0xff]   ;;  %v4779_v51 = vld [vmem:[%s5367_s1 + $0x30] sm:$0xff]  }
 0x101   : > { %4258 = vmatprep.subr.bf16.mxu1 %v1663_v52  ;;  %4238 = vmatprep.subr.bf16.mxu0 %v1663_v52 }
 0x103   : > { %4259 = vmatpush3.bf16.msra.mxu1 %v1663_v52  ;;  %4239 = vmatpush3.bf16.msra.mxu0 %v1663_v52  ;;  %v4781_v52 = vld [vmem:[%s5365_s7 + $0x38] sm:$0xff]  }
 0x104   : > { %4296 = vmatprep.subr.bf16.mxu1 %v4735_v54  ;;  %4276 = vmatprep.subr.bf16.mxu0 %v4735_v54 }
 0x106   : > { %4205 = vmatmul.mubr.msk.bf16.gmra.mrb[4].mxu0 %vm523_vm2, %v4720_v53  ;;  %4225 = vmatmul.mubr.msk.bf16.gmra.mrb[4].mxu1 %vm523_vm2, %v4721_v55  ;;  %v4782_v53 = vld [vmem:[%s5367_s1 + $0x38] sm:$0xff]   ;;  %v4784_v55 = vld [vmem:[%s5367_s1 + $0x40] sm:$0xff]  }
 0x107   : > { %4208 = vmatprep.mubr.msk.bf16.mxu0 %vm523_vm2, %v4722_v56  ;;  %4228 = vmatprep.mubr.msk.bf16.mxu1 %vm523_vm2, %v4723_v57  ;;  %v4785_v56 = vld [vmem:[%s5351_s19 + $0xc] sm:$0xff]   ;;  %v4786_v57 = vld [vmem:[%s5358_s28 + $0xc] sm:$0xff]  }
 0x10e   : > { %4209 = vmatmul.mubr.msk.bf16.gmra.mrb[8].mxu0 %vm523_vm2, %v4724_v58  ;;  %4229 = vmatmul.mubr.msk.bf16.gmra.mrb[8].mxu1 %vm523_vm2, %v4725_v59  ;;  %v4787_v58 = vld [vmem:[%s5351_s19 + $0x14] sm:$0xff]   ;;  %v4788_v59 = vld [vmem:[%s5358_s28 + $0x14] sm:$0xff]  }
 0x10f   : > { %4212 = vmatprep.mubr.msk.bf16.mxu0 %vm523_vm2, %v4727_v60  ;;  %4232 = vmatprep.mubr.msk.bf16.mxu1 %vm523_vm2, %v4728_v61  ;;  %v4789_v60 = vld [vmem:[%s5351_s19 + $0x1c] sm:$0xff]   ;;  %v4790_v61 = vld [vmem:[%s5358_s28 + $0x1c] sm:$0xff]  }
 0x116   : > { %4213 = vmatmul.mubr.msk.bf16.gmra.mrb[12].mxu0 %vm523_vm2, %v4729_v62  ;;  %4233 = vmatmul.mubr.msk.bf16.gmra.mrb[12].mxu1 %vm523_vm2, %v4730_v63  ;;  %v4791_v62 = vld [vmem:[%s5351_s19 + $0x24] sm:$0xff]   ;;  %v4792_v63 = vld [vmem:[%s5358_s28 + $0x24] sm:$0xff]  }
 0x117   : > { %4240 = vmatprep.mubr.msk.bf16.mxu0 %vm523_vm2, %v4731_v0  ;;  %4260 = vmatprep.mubr.msk.bf16.mxu1 %vm523_vm2, %v4732_v1  ;;  %v4793_v0 = vld [vmem:[%s5351_s19 + $0x2c] sm:$0xff]   ;;  %v4794_v1 = vld [vmem:[%s5358_s28 + $0x2c] sm:$0xff]  }
 0x11e   : > { %4241 = vmatmul.mubr.msk.bf16.vlgmr.msra.gmra.mrb[0].mxu0 %vm523_vm2, %v4733_v4  ;;  %4261 = vmatmul.mubr.msk.bf16.vlgmr.msra.gmra.mrb[0].mxu1 %vm523_vm2, %v4734_v5  ;;  %v4796_v4 = vld [vmem:[%s5358_s28 + $0x34] sm:$0xff]   ;;  %v4797_v5 = vld [vmem:[%s5351_s19 + $0x3c] sm:$0xff]  }
 0x11f   : > { %4297 = vmatpush3.bf16.msra.mxu1 %v4735_v54  ;;  %4277 = vmatpush3.bf16.msra.mxu0 %v4735_v54  ;;  %v4783_v54 = vld [vmem:[%s5365_s7 + $0x40] sm:$0xff]  }
 0x120   : > { %4244 = vmatprep.mubr.msk.bf16.mxu0 %vm523_vm2, %v4736_v6  ;;  %4264 = vmatprep.mubr.msk.bf16.mxu1 %vm523_vm2, %v4737_v7  ;;  %v4798_v6 = vld [vmem:[%s5358_s28 + $0x3c] sm:$0xff]   ;;  %v4799_v7 = vld [vmem:[%s5351_s19 + $0x44] sm:$0xff]   ;;  %s4953_s19 = sshll.u32 %s5037_s23, 4  ;;  %s4954_s19 = int_to_ptr.vmem [resolvable:$false] %s4953_s19 }
 0x121   : > { %4298 = vmatprep.subr.bf16.mxu1 %v2067_v8  ;;  %4278 = vmatprep.subr.bf16.mxu0 %v2067_v8  ;;  %s4955_s18 = scalar_lea.vmem %s4954_s19, 2048  ;;  %p4956_p5 = scmp.lt.s32.totalorder %s5707_s4, %s4954_s19 }
 0x122   : > { %p4957_p11 = scmp.lt.s32.totalorder %s4955_s18, %s4949_s12 }
 0x123   : > { %4299 = vmatpush3.bf16.msra.mxu1 %v2067_v8  ;;  %4279 = vmatpush3.bf16.msra.mxu0 %v2067_v8  ;;  %v4800_v8 = vld [vmem:[%s5358_s28 + $0x44] sm:$0xff]  }
 0x124   : > { %4336 = vmatprep.subr.bf16.mxu1 %v4753_v10  ;;  %4316 = vmatprep.subr.bf16.mxu0 %v4753_v10  ;;  %p4958_p4 = por %p4957_p11, %p4956_p5 }
 0x126   : > { %4245 = vmatmul.mubr.msk.bf16.gmra.mrb[4].mxu0 %vm523_vm2, %v4738_v9  ;;  %4265 = vmatmul.mubr.msk.bf16.gmra.mrb[4].mxu1 %vm523_vm2, %v4739_v11  ;;  %v5613_v9 = vld [vmem:[%s5760_s5] ss:$0 sm:$0xff]  ;;  %p4959_p13 = pnand %p4958_p4, %p4952_p1 }
 0x127   : > { %4248 = vmatprep.mubr.msk.bf16.mxu0 %vm523_vm2, %v4740_v12  ;;  %4268 = vmatprep.mubr.msk.bf16.mxu1 %vm523_vm2, %v4741_v13 }
 0x12e   : > { %4249 = vmatmul.mubr.msk.bf16.gmra.mrb[8].mxu0 %vm523_vm2, %v4742_v14  ;;  %4269 = vmatmul.mubr.msk.bf16.gmra.mrb[8].mxu1 %vm523_vm2, %v4743_v15 }
 0x12f   : > { %4252 = vmatprep.mubr.msk.bf16.mxu0 %vm523_vm2, %v4745_v16  ;;  %4272 = vmatprep.mubr.msk.bf16.mxu1 %vm523_vm2, %v4746_v17 }
 0x136   : > { %4253 = vmatmul.mubr.msk.bf16.gmra.mrb[12].mxu0 %vm523_vm2, %v4747_v18  ;;  %4273 = vmatmul.mubr.msk.bf16.gmra.mrb[12].mxu1 %vm523_vm2, %v4748_v19 }
 0x137   : > { %4280 = vmatprep.mubr.msk.bf16.mxu0 %vm523_vm2, %v4749_v20  ;;  %4300 = vmatprep.mubr.msk.bf16.mxu1 %vm523_vm2, %v4750_v21 }
 0x13e   : > { %4281 = vmatmul.mubr.msk.bf16.vlgmr.msra.gmra.mrb[0].mxu0 %vm523_vm2, %v4751_v23  ;;  %4301 = vmatmul.mubr.msk.bf16.vlgmr.msra.gmra.mrb[0].mxu1 %vm523_vm2, %v4752_v24 }
 0x13f   : > { %4337 = vmatpush3.bf16.msra.mxu1 %v4753_v10  ;;  %4317 = vmatpush3.bf16.msra.mxu0 %v4753_v10 }
 0x140   : > { %4284 = vmatprep.mubr.msk.bf16.mxu0 %vm523_vm2, %v4754_v25  ;;  %4304 = vmatprep.mubr.msk.bf16.mxu1 %vm523_vm2, %v4755_v26 }
 0x141   : > { %4338 = vmatprep.subr.bf16.mxu1 %v2471_v27  ;;  %4318 = vmatprep.subr.bf16.mxu0 %v2471_v27 }
 0x143   : > { %4339 = vmatpush3.bf16.msra.mxu1 %v2471_v27  ;;  %4319 = vmatpush3.bf16.msra.mxu0 %v2471_v27 }
 0x144   : > { %4376 = vmatprep.subr.bf16.mxu1 %v4771_v28  ;;  %4356 = vmatprep.subr.bf16.mxu0 %v4771_v28 }
 0x146   : > { %4285 = vmatmul.mubr.msk.bf16.gmra.mrb[4].mxu0 %vm523_vm2, %v4756_v29  ;;  %4305 = vmatmul.mubr.msk.bf16.gmra.mrb[4].mxu1 %vm523_vm2, %v4757_v30 }
 0x147   : > { %4288 = vmatprep.mubr.msk.bf16.mxu0 %vm523_vm2, %v4758_v31  ;;  %4308 = vmatprep.mubr.msk.bf16.mxu1 %vm523_vm2, %v4759_v32 }
 0x14e   : > { %4289 = vmatmul.mubr.msk.bf16.gmra.mrb[8].mxu0 %vm523_vm2, %v4760_v33  ;;  %4309 = vmatmul.mubr.msk.bf16.gmra.mrb[8].mxu1 %vm523_vm2, %v4761_v34 }
 0x14f   : > { %4292 = vmatprep.mubr.msk.bf16.mxu0 %vm523_vm2, %v4763_v35  ;;  %4312 = vmatprep.mubr.msk.bf16.mxu1 %vm523_vm2, %v4764_v36 }
 0x156   : > { %4293 = vmatmul.mubr.msk.bf16.gmra.mrb[12].mxu0 %vm523_vm2, %v4765_v37  ;;  %4313 = vmatmul.mubr.msk.bf16.gmra.mrb[12].mxu1 %vm523_vm2, %v4766_v38 }
 0x157   : > { %4320 = vmatprep.mubr.msk.bf16.mxu0 %vm523_vm2, %v4767_v39  ;;  %4340 = vmatprep.mubr.msk.bf16.mxu1 %vm523_vm2, %v4768_v40 }
 0x15e   : > { %4321 = vmatmul.mubr.msk.bf16.vlgmr.msra.gmra.mrb[0].mxu0 %vm523_vm2, %v4769_v42  ;;  %4341 = vmatmul.mubr.msk.bf16.vlgmr.msra.gmra.mrb[0].mxu1 %vm523_vm2, %v4770_v43 }
 0x15f   : > { %4377 = vmatpush3.bf16.msra.mxu1 %v4771_v28  ;;  %4357 = vmatpush3.bf16.msra.mxu0 %v4771_v28 }
 0x160   : > { %4324 = vmatprep.mubr.msk.bf16.mxu0 %vm523_vm2, %v4772_v44  ;;  %4344 = vmatprep.mubr.msk.bf16.mxu1 %vm523_vm2, %v4773_v45 }
 0x161   : > { %4378 = vmatprep.subr.bf16.mxu1 %v2875_v46  ;;  %4358 = vmatprep.subr.bf16.mxu0 %v2875_v46 }
 0x163   : > { %4379 = vmatpush3.bf16.msra.mxu1 %v2875_v46  ;;  %4359 = vmatpush3.bf16.msra.mxu0 %v2875_v46 }
 0x166   : > { %4325 = vmatmul.mubr.msk.bf16.gmra.mrb[4].mxu0 %vm523_vm2, %v4774_v47  ;;  %4345 = vmatmul.mubr.msk.bf16.gmra.mrb[4].mxu1 %vm523_vm2, %v4775_v48 }
 0x167   : > { %4328 = vmatprep.mubr.msk.bf16.mxu0 %vm523_vm2, %v4776_v49  ;;  %4348 = vmatprep.mubr.msk.bf16.mxu1 %vm523_vm2, %v4777_v3 }
 0x16e   : > { %4329 = vmatmul.mubr.msk.bf16.gmra.mrb[8].mxu0 %vm523_vm2, %v4778_v50  ;;  %4349 = vmatmul.mubr.msk.bf16.gmra.mrb[8].mxu1 %vm523_vm2, %v4779_v51 }
 0x16f   : > { %4332 = vmatprep.mubr.msk.bf16.mxu0 %vm523_vm2, %v4781_v52  ;;  %4352 = vmatprep.mubr.msk.bf16.mxu1 %vm523_vm2, %v4782_v53 }
 0x176   : > { %4333 = vmatmul.mubr.msk.bf16.gmra.mrb[12].mxu0 %vm523_vm2, %v4783_v54  ;;  %4353 = vmatmul.mubr.msk.bf16.gmra.mrb[12].mxu1 %vm523_vm2, %v4784_v55 }
 0x177   : > { %4360 = vmatprep.mubr.msk.bf16.mxu0 %vm523_vm2, %v4785_v56  ;;  %4380 = vmatprep.mubr.msk.bf16.mxu1 %vm523_vm2, %v4786_v57 }
 0x17e   : > { %4361 = vmatmul.mubr.msk.bf16.vlgmr.msra.gmra.mrb[0].mxu0 %vm523_vm2, %v4787_v58  ;;  %4381 = vmatmul.mubr.msk.bf16.vlgmr.msra.gmra.mrb[0].mxu1 %vm523_vm2, %v4788_v59 }
 0x17f   : > { %4364 = vmatprep.mubr.msk.bf16.mxu0 %vm523_vm2, %v4789_v60  ;;  %4384 = vmatprep.mubr.msk.bf16.mxu1 %vm523_vm2, %v4790_v61 }
 0x186   : > { %4365 = vmatmul.mubr.msk.bf16.gmra.mrb[4].mxu0 %vm523_vm2, %v4791_v62  ;;  %4385 = vmatmul.mubr.msk.bf16.gmra.mrb[4].mxu1 %vm523_vm2, %v4792_v63 }
 0x187   : > { %4368 = vmatprep.mubr.msk.bf16.mxu0 %vm523_vm2, %v4793_v0  ;;  %4388 = vmatprep.mubr.msk.bf16.mxu1 %vm523_vm2, %v4794_v1 }
 0x18e   : > { %4369 = vmatmul.mubr.msk.bf16.gmra.mrb[8].mxu0 %vm523_vm2, %v4795_v2  ;;  %4389 = vmatmul.mubr.msk.bf16.gmra.mrb[8].mxu1 %vm523_vm2, %v4796_v4 }
 0x18f   : > { %4372 = vmatprep.mubr.msk.bf16.mxu0 %vm523_vm2, %v4797_v5  ;;  %4392 = vmatprep.mubr.msk.bf16.mxu1 %vm523_vm2, %v4798_v6 }
 0x196   : > { %4373 = vmatmul.mubr.msk.bf16.gmra.mrb[12].mxu0 %vm523_vm2, %v4799_v7  ;;  %4393 = vmatmul.mubr.msk.bf16.gmra.mrb[12].mxu1 %vm523_vm2, %v4800_v8 }
 0x251   : > { %v4362_v10 = vpop.f32.mrb[0].mxu0  ;;  %v4382_v11 = vpop.f32.mrb[0].mxu1 }
 0x252   : > { %v3175_v12 = vadd.f32 %v4362_v10, %v5613_v9  ;;  %v3207_v13 = vadd.f32 %v4382_v11, %v5613_v9  ;;  %v2911_v14 = vpop.f32.mrb[1].mxu0  ;;  %v3088_v15 = vpop.f32.mrb[1].mxu1 }
 0x253   : > { %v3173_v16 = vadd.f32 %v5613_v9, %v2911_v14  ;;  %v3205_v17 = vadd.f32 %v5613_v9, %v3088_v15  ;;  %v4363_v18 = vpop.f32.mrb[2].mxu0  ;;  %v4383_v19 = vpop.f32.mrb[2].mxu1 }
 0x254   : > { %v3191_v20 = vmax.f32 %v3175_v12, 0.0  ;;  %v3223_v21 = vmax.f32 %v3207_v13, 0.0  ;;  %v3176_v22 = vadd.f32 %v4363_v18, %v5613_v9  ;;  %v3208_v23 = vadd.f32 %v4383_v19, %v5613_v9  ;;  %v2914_v24 = vpop.f32.mrb[3].mxu0  ;;  %v3091_v25 = vpop.f32.mrb[3].mxu1 }
 0x255   : > { %v3189_v26 = vmax.f32 %v3173_v16, 0.0  ;;  %v3221_v27 = vmax.f32 %v3205_v17, 0.0  ;;  %v3174_v28 = vadd.f32 %v5613_v9, %v2914_v24  ;;  %v3206_v29 = vadd.f32 %v5613_v9, %v3091_v25 }
 0x256   : > { %v3239_v30 = vmax.f32 %v3191_v20, %v3223_v21  ;;  %v3271_v31 = vrot.slane %v3223_v21, 7  ;;  %v3192_v32 = vmax.f32 %v3176_v22, 0.0  ;;  %v3224_v33 = vmax.f32 %v3208_v23, 0.0 }
 0x257   : > { %v3237_v34 = vmax.f32 %v3189_v26, %v3221_v27  ;;  %v3269_v35 = vrot.slane %v3221_v27, 7  ;;  %v3190_v36 = vmax.f32 %v3174_v28, 0.0  ;;  %v3222_v37 = vmax.f32 %v3206_v29, 0.0 }
 0x258   : > { %v3304_v38 = vsel %vm3301_vm3, 0.0, %v3271_v31  ;;  %v3240_v39 = vmax.f32 %v3192_v32, %v3224_v33  ;;  %v3272_v40 = vrot.slane %v3224_v33, 7 }
 0x259   : > { %v3320_v41 = vmax.f32 %v3239_v30, %v3304_v38  ;;  %v3302_v42 = vsel %vm3301_vm3, 0.0, %v3269_v35  ;;  %v3238_v43 = vmax.f32 %v3190_v36, %v3222_v37  ;;  %v3270_v44 = vrot.slane %v3222_v37, 7  ;;  %v4366_v45 = vpop.f32.mrb[4].mxu0  ;;  %v4386_v46 = vpop.f32.mrb[4].mxu1 }
 0x25a   : > { %v3318_v47 = vmax.f32 %v3237_v34, %v3302_v42  ;;  %v3305_v48 = vsel %vm3301_vm3, 0.0, %v3272_v40  ;;  %v3179_v49 = vadd.f32 %v4366_v45, %v5613_v9  ;;  %v3211_v3 = vadd.f32 %v4386_v46, %v5613_v9  ;;  %v2927_v50 = vpop.f32.mrb[5].mxu0  ;;  %v3104_v51 = vpop.f32.mrb[5].mxu1 }
 0x25b   : > { %3337 = vst.msk [vmem:[#allocation2 + $0x10] sm:$0xff] %vm3334_vm4, %v3320_v41  ;;  %v3321_v52 = vmax.f32 %v3240_v39, %v3305_v48  ;;  %v3303_v53 = vsel %vm3301_vm3, 0.0, %v3270_v44  ;;  %v3177_v54 = vadd.f32 %v5613_v9, %v2927_v50  ;;  %v3209_v55 = vadd.f32 %v5613_v9, %v3104_v51  ;;  %v4367_v56 = vpop.f32.mrb[6].mxu0  ;;  %v4387_v57 = vpop.f32.mrb[6].mxu1 }
 0x25c   : > { %3335 = vst.msk [vmem:[#allocation2] sm:$0xff] %vm3334_vm4, %v3318_v47  ;;  %v3319_v58 = vmax.f32 %v3238_v43, %v3303_v53  ;;  %v3195_v59 = vmax.f32 %v3179_v49, 0.0  ;;  %v3227_v60 = vmax.f32 %v3211_v3, 0.0  ;;  %v3180_v61 = vadd.f32 %v4367_v56, %v5613_v9  ;;  %v2930_v62 = vpop.f32.mrb[7].mxu0  ;;  %v3107_v63 = vpop.f32.mrb[7].mxu1 }
 0x25d   : > { %3338 = vst.msk [vmem:[#allocation2 + $0x18] sm:$0xff] %vm3334_vm4, %v3321_v52  ;;  %v3193_v0 = vmax.f32 %v3177_v54, 0.0  ;;  %v3225_v1 = vmax.f32 %v3209_v55, 0.0  ;;  %v3212_v2 = vadd.f32 %v4387_v57, %v5613_v9  ;;  %v3178_v4 = vadd.f32 %v5613_v9, %v2930_v62 }
 0x25e   : > { %3336 = vst.msk [vmem:[#allocation2 + $0x8] sm:$0xff] %vm3334_vm4, %v3319_v58  ;;  %v3243_v5 = vmax.f32 %v3195_v59, %v3227_v60  ;;  %v3275_v6 = vrot.slane %v3227_v60, 7  ;;  %v3196_v7 = vmax.f32 %v3180_v61, 0.0  ;;  %v3210_v8 = vadd.f32 %v5613_v9, %v3107_v63 }
 0x25f   : > { %v3241_v10 = vmax.f32 %v3193_v0, %v3225_v1  ;;  %v3273_v11 = vrot.slane %v3225_v1, 7  ;;  %v3228_v12 = vmax.f32 %v3212_v2, 0.0  ;;  %v3194_v13 = vmax.f32 %v3178_v4, 0.0 }
 0x260   : > { %v3308_v14 = vsel %vm3301_vm3, 0.0, %v3275_v6  ;;  %v3226_v15 = vmax.f32 %v3210_v8, 0.0 }
 0x261   : > { %v3324_v16 = vmax.f32 %v3243_v5, %v3308_v14  ;;  %v3306_v17 = vsel %vm3301_vm3, 0.0, %v3273_v11  ;;  %v3244_v18 = vmax.f32 %v3196_v7, %v3228_v12  ;;  %v3276_v19 = vrot.slane %v3228_v12, 7  ;;  %v4370_v20 = vpop.f32.mrb[8].mxu0  ;;  %v4390_v21 = vpop.f32.mrb[8].mxu1 }
 0x262   : > { %v3322_v22 = vmax.f32 %v3241_v10, %v3306_v17  ;;  %v3242_v23 = vmax.f32 %v3194_v13, %v3226_v15  ;;  %v3274_v24 = vrot.slane %v3226_v15, 7  ;;  %v3183_v25 = vadd.f32 %v4370_v20, %v5613_v9  ;;  %v2943_v26 = vpop.f32.mrb[9].mxu0  ;;  %v3120_v27 = vpop.f32.mrb[9].mxu1  ;;  %v3353_v34 = vld [vmem:[#allocation2 + $0x10] sm:$0xff] }
 0x263   : > { %3341 = vst.msk [vmem:[#allocation2 + $0x30] sm:$0xff] %vm3334_vm4, %v3324_v16  ;;  %v3309_v28 = vsel %vm3301_vm3, 0.0, %v3276_v19  ;;  %v3215_v29 = vadd.f32 %v4390_v21, %v5613_v9  ;;  %v3181_v30 = vadd.f32 %v5613_v9, %v2943_v26  ;;  %v3213_v31 = vadd.f32 %v5613_v9, %v3120_v27  ;;  %v4371_v32 = vpop.f32.mrb[10].mxu0  ;;  %v4391_v33 = vpop.f32.mrb[10].mxu1  ;;  %v3351_v42 = vld [vmem:[#allocation2] sm:$0xff] }
 0x264   : > { %v5648_v35 = vld [vmem:[#allocation2 + $0x18] sm:$0xff]  ;;  %3339 = vst.msk [vmem:[#allocation2 + $0x20] sm:$0xff] %vm3334_vm4, %v3322_v22  ;;  %v3325_v36 = vmax.f32 %v3244_v18, %v3309_v28  ;;  %v3307_v37 = vsel %vm3301_vm3, 0.0, %v3274_v24  ;;  %v3199_v38 = vmax.f32 %v3183_v25, 0.0  ;;  %v3184_v39 = vadd.f32 %v4371_v32, %v5613_v9  ;;  %v2946_v40 = vpop.f32.mrb[11].mxu0  ;;  %v3123_v41 = vpop.f32.mrb[11].mxu1 }
 0x265   : > { %v3368_v43 = vmax.f32 %v3353_v34, %v5648_v35  ;;  %v3352_v44 = vld [vmem:[#allocation2 + $0x8] sm:$0xff]  ;;  %v3323_v45 = vmax.f32 %v3242_v23, %v3307_v37  ;;  %v3231_v46 = vmax.f32 %v3215_v29, 0.0  ;;  %v3197_v47 = vmax.f32 %v3181_v30, 0.0 }
 0x266   : > { %v3367_v48 = vmax.f32 %v3351_v42, %v3352_v44  ;;  %3342 = vst.msk [vmem:[#allocation2 + $0x38] sm:$0xff] %vm3334_vm4, %v3325_v36  ;;  %v3229_v49 = vmax.f32 %v3213_v31, 0.0  ;;  %v3200_v3 = vmax.f32 %v3184_v39, 0.0  ;;  %v3216_v50 = vadd.f32 %v4391_v33, %v5613_v9 }
 0x267   : > { %v3376_v51 = vmax.f32 %v3368_v43, %v3352_v44  ;;  %3340 = vst.msk [vmem:[#allocation2 + $0x28] sm:$0xff] %vm3334_vm4, %v3323_v45  ;;  %v3247_v52 = vmax.f32 %v3199_v38, %v3231_v46  ;;  %v3279_v53 = vrot.slane %v3231_v46, 7  ;;  %v3182_v54 = vadd.f32 %v5613_v9, %v2946_v40 }
 0x268   : > { %v3245_v55 = vmax.f32 %v3197_v47, %v3229_v49  ;;  %v3277_v56 = vrot.slane %v3229_v49, 7  ;;  %v3232_v57 = vmax.f32 %v3216_v50, 0.0  ;;  %v3214_v58 = vadd.f32 %v5613_v9, %v3123_v41  ;;  %3375 = vst.msk [vmem:[%s5661_s13] sm:$0xff] %vm3334_vm4, %v3367_v48 }
 0x269   : > { %v3312_v59 = vsel %vm3301_vm3, 0.0, %v3279_v53  ;;  %v3198_v60 = vmax.f32 %v3182_v54, 0.0  ;;  %v4374_v61 = vpop.f32.mrb[12].mxu0  ;;  %v4394_v62 = vpop.f32.mrb[12].mxu1  ;;  %3963 = vst.msk [vmem:[%s5661_s13 + $0x8] sm:$0xff] %vm3334_vm4, %v3376_v51 }
 0x26a   : > { %v3328_v63 = vmax.f32 %v3247_v52, %v3312_v59  ;;  %v3310_v0 = vsel %vm3301_vm3, 0.0, %v3277_v56  ;;  %v3248_v1 = vmax.f32 %v3200_v3, %v3232_v57  ;;  %v3280_v2 = vrot.slane %v3232_v57, 7  ;;  %v2959_v4 = vpop.f32.mrb[13].mxu0  ;;  %v3136_v5 = vpop.f32.mrb[13].mxu1  ;;  %v3357_v19 = vld [vmem:[#allocation2 + $0x30] sm:$0xff] }
 0x26b   : > { %v3326_v6 = vmax.f32 %v3245_v55, %v3310_v0  ;;  %v3230_v7 = vmax.f32 %v3214_v58, 0.0  ;;  %v3187_v8 = vadd.f32 %v4374_v61, %v5613_v9  ;;  %v3219_v10 = vadd.f32 %v4394_v62, %v5613_v9  ;;  %v4375_v11 = vpop.f32.mrb[14].mxu0  ;;  %v4395_v12 = vpop.f32.mrb[14].mxu1  ;;  %v3355_v25 = vld [vmem:[#allocation2 + $0x20] sm:$0xff] }
 0x26c   : > { %3345 = vst.msk [vmem:[#allocation2 + $0x50] sm:$0xff] %vm3334_vm4, %v3328_v63  ;;  %v3313_v13 = vsel %vm3301_vm3, 0.0, %v3280_v2  ;;  %v3185_v14 = vadd.f32 %v5613_v9, %v2959_v4  ;;  %v3217_v15 = vadd.f32 %v5613_v9, %v3136_v5  ;;  %v3188_v16 = vadd.f32 %v4375_v11, %v5613_v9  ;;  %v2962_v17 = vpop.f32.mrb[15].mxu0  ;;  %v3139_v18 = vpop.f32.mrb[15].mxu1 }
 0x26d   : > { %v3358_v20 = vld [vmem:[#allocation2 + $0x38] sm:$0xff]  ;;  %3343 = vst.msk [vmem:[#allocation2 + $0x40] sm:$0xff] %vm3334_vm4, %v3326_v6  ;;  %v3329_v21 = vmax.f32 %v3248_v1, %v3313_v13  ;;  %v3246_v22 = vmax.f32 %v3198_v60, %v3230_v7  ;;  %v3278_v23 = vrot.slane %v3230_v7, 7  ;;  %v3203_v24 = vmax.f32 %v3187_v8, 0.0 }
 0x26e   : > { %v3370_v26 = vmax.f32 %v3357_v19, %v3358_v20  ;;  %v3356_v27 = vld [vmem:[#allocation2 + $0x28] sm:$0xff]  ;;  %v3235_v28 = vmax.f32 %v3219_v10, 0.0  ;;  %v3201_v29 = vmax.f32 %v3185_v14, 0.0  ;;  %v3233_v30 = vmax.f32 %v3217_v15, 0.0 }
 0x26f   : > { %v3369_v31 = vmax.f32 %v3355_v25, %v3356_v27  ;;  %3346 = vst.msk [vmem:[#allocation2 + $0x58] sm:$0xff] %vm3334_vm4, %v3329_v21  ;;  %v3311_v32 = vsel %vm3301_vm3, 0.0, %v3278_v23  ;;  %v3204_v33 = vmax.f32 %v3188_v16, 0.0  ;;  %v3220_v34 = vadd.f32 %v4395_v12, %v5613_v9 }
 0x270   : > { %v3378_v36 = vmax.f32 %v3370_v26, %v3356_v27  ;;  %v3327_v37 = vmax.f32 %v3246_v22, %v3311_v32  ;;  %v3251_v38 = vmax.f32 %v3203_v24, %v3235_v28  ;;  %v3283_v39 = vrot.slane %v3235_v28, 7 }
 0x271   : > { %v3377_v40 = vmax.f32 %v3369_v31, %v5648_v35  ;;  %v3249_v41 = vmax.f32 %v3201_v29, %v3233_v30  ;;  %v3281_v42 = vrot.slane %v3233_v30, 7  ;;  %v3236_v43 = vmax.f32 %v3220_v34, 0.0 }
 0x272   : > { %3344 = vst.msk [vmem:[#allocation2 + $0x48] sm:$0xff] %vm3334_vm4, %v3327_v37  ;;  %v3316_v44 = vsel %vm3301_vm3, 0.0, %v3283_v39  ;;  %v3186_v45 = vadd.f32 %v5613_v9, %v2962_v17  ;;  %v3218_v46 = vadd.f32 %v5613_v9, %v3139_v18  ;;  %3965 = vst.msk [vmem:[%s5661_s13 + $0x18] sm:$0xff] %vm3334_vm4, %v3378_v36 }
 0x273   : > { %v3332_v47 = vmax.f32 %v3251_v38, %v3316_v44  ;;  %v3314_v48 = vsel %vm3301_vm3, 0.0, %v3281_v42  ;;  %v3252_v49 = vmax.f32 %v3204_v33, %v3236_v43  ;;  %v3284_v3 = vrot.slane %v3236_v43, 7  ;;  %3964 = vst.msk [vmem:[%s5661_s13 + $0x10] sm:$0xff] %vm3334_vm4, %v3377_v40  ;;  %v3361_v53 = vld [vmem:[#allocation2 + $0x50] sm:$0xff] }
 0x274   : > { %v3330_v35 = vmax.f32 %v3249_v41, %v3314_v48  ;;  %v3202_v50 = vmax.f32 %v3186_v45, 0.0  ;;  %v3234_v51 = vmax.f32 %v3218_v46, 0.0  ;;  %v3359_v59 = vld [vmem:[#allocation2 + $0x40] sm:$0xff] }
 0x275   : > { %3349 = vst.msk [vmem:[#allocation2 + $0x70] sm:$0xff] %vm3334_vm4, %v3332_v47  ;;  %v3317_v52 = vsel %vm3301_vm3, 0.0, %v3284_v3 }
 0x276   : > { %v3362_v54 = vld [vmem:[#allocation2 + $0x58] sm:$0xff]  ;;  %3347 = vst.msk [vmem:[#allocation2 + $0x60] sm:$0xff] %vm3334_vm4, %v3330_v35  ;;  %v3333_v9 = vmax.f32 %v3252_v49, %v3317_v52  ;;  %v3250_v55 = vmax.f32 %v3202_v50, %v3234_v51  ;;  %v3282_v56 = vrot.slane %v3234_v51, 7 }
 0x277   : > { %v3372_v57 = vmax.f32 %v3361_v53, %v3362_v54 }
 0x278   : > { %3350 = vst.msk [vmem:[#allocation2 + $0x78] sm:$0xff] %vm3334_vm4, %v3333_v9  ;;  %v3315_v58 = vsel %vm3301_vm3, 0.0, %v3282_v56 }
 0x279   : > { %v3360_v60 = vld [vmem:[#allocation2 + $0x48] sm:$0xff]  ;;  %v3331_v61 = vmax.f32 %v3250_v55, %v3315_v58 }
 0x27a   : > { %v3371_v62 = vmax.f32 %v3359_v59, %v3360_v60  ;;  %v3380_v63 = vmax.f32 %v3372_v57, %v3360_v60 }
 0x27b   : > { %3348 = vst.msk [vmem:[#allocation2 + $0x68] sm:$0xff] %vm3334_vm4, %v3331_v61 }
 0x27c   : > { %v3379_v0 = vmax.f32 %v3371_v62, %v3358_v20  ;;  %3967 = vst.msk [vmem:[%s5661_s13 + $0x28] sm:$0xff] %vm3334_vm4, %v3380_v63  ;;  %v3365_v1 = vld [vmem:[#allocation2 + $0x70] sm:$0xff] }
 0x27d   : > { %v3363_v5 = vld [vmem:[#allocation2 + $0x60] sm:$0xff] }
 0x27e   : > { %3966 = vst.msk [vmem:[%s5661_s13 + $0x20] sm:$0xff] %vm3334_vm4, %v3379_v0 }
 0x27f   : > { %v3366_v2 = vld [vmem:[#allocation2 + $0x78] sm:$0xff] }
 0x280   : > { %v3374_v4 = vmax.f32 %v3365_v1, %v3366_v2 }
 0x282   : > { %v3364_v6 = vld [vmem:[#allocation2 + $0x68] sm:$0xff] }
 0x283   : > { %v3373_v7 = vmax.f32 %v3363_v5, %v3364_v6  ;;  %v3382_v8 = vmax.f32 %v3374_v4, %v3364_v6 }
 0x285   : > { %v3381_v10 = vmax.f32 %v3373_v7, %v3362_v54  ;;  %3969 = vst.msk [vmem:[%s5661_s13 + $0x38] sm:$0xff] %vm3334_vm4, %v3382_v8 }
 0x287   : > { %3968 = vst.msk [vmem:[%s5661_s13 + $0x30] sm:$0xff] %vm3334_vm4, %v3381_v10 }
 0x288   : > { %4962 = shalt.err (!%p4959_p13)
}
 0x289   : > { %s4963_s11 = scalar_lea.hbm %s5705_s30, 1024  ;;  %s4967_s7 = scalar_lea.hbm %s5761_s6, 2048 }
 0x28a   : > { %p4964_p3 = scmp.ne.s32.totalorder %s5705_s30, %s4963_s11  ;;  %p4968_p0 = scmp.lt.u32.totalorder %s5705_s30, %s5761_s6 }
 0x28b   : > { %p4969_p6 = scmp.lt.u32.totalorder %s4967_s7, %s4963_s11  ;;  %p4971_p9 = scmp.lt.u32.totalorder %s4963_s11, %s5705_s30 }
 0x28c   : > { %p4965_p2 = pnand %p4964_p3, %p5799_p10 }
 0x28d   : > { %p4970_p7 = por %p4969_p6, %p4968_p0 }
 0x28e   : > { %p4966_p12 = pneg %p4965_p2 }
 0x28f   : > { %p4972_p8 = por %p4971_p9, %p4970_p7 }
 0x291   : > { %p4973_p1 = pnand %p4972_p8, %p4966_p12 }
 0x293   : > { %4976 = shalt.err (!%p4973_p1)
}
 0x294   : > { %s5038_s8 = smov 128   ;;  %s5039_s27 = smov 8  }
 0x295   : > { %4610 = dma.vmem_to_hbm [thread:$0]  (%p5799_p10), %s5707_s4, 1024, %s5705_s30, %s3392_s25, %s5038_s8, %s5038_s8, %s5039_s27  }
 0x296 PF: > { %s3420_s15 = sand.u32 1, %s5015_s21   ;;  %p5800_p5 = scmp.ne.s32.totalorder %s5781_s10, 0 }
 0x297   : > { %p5801_p11 = scmp.ge.s32.totalorder %s5027_s24, 2  ;;  %s3421_s13 = scalar_lea.sflag [#allocation5], %s3420_s15 }
 0x299   : > { %p4630_p4 = pnand %p5801_p11, %p5800_p5 }
 0x29b   : > { %5010 = dma.done.wait (!%p4630_p4), %s3421_s13, 1024  }
 0x29c   : > { %5012 = vsyncadd (!%p4630_p4), %s3421_s13, 4294966272  ;;  %s5802_s24 = sld [smem:[#allocation19_spill]]  ;;  %s5803_s26 = sld [smem:[#allocation18_spill]] }
 0x29d   : > { %s5804_s23 = sld [smem:[#allocation20_spill]]  ;;  %s5805_s21 = smov %s5019_s22 }
 0x2a2   : > { %p25_p13 = scmp.ge.s32.totalorder %s5802_s24, 4   ;;  %s5806_s22 = smov %s5803_s26 }
 0x2a4   :  { %27 = sbr.rel (!%p25_p13) target bundleno = 12 (0xc), region = 147 }
 0x2ab   :  { %3426 = vsyncpa [#allocation4], 1 }
 0x2ac   :  { %3428 = vsyncpa [#allocation4 + $0x1], 1 }
 0x2ad   :  { %3429 = vsyncpa [#allocation7], 1 }
 0x2ae   :  { %3431 = vsyncpa [#allocation7 + $0x1], 1 }
 0x2af   :  { %3432 = vsyncpa [#allocation10], 1 }
 0x2b0   :  { %3434 = vsyncpa [#allocation10 + $0x1], 1 }
 0x2b1   :  { %3435 = vsyncpa [#allocation5], 1 }
 0x2b2   :  { %3437 = vsyncpa [#allocation5 + $0x1], 1 }

</bundles_post_ra>
